<compile_context>
chip_gen: v5e
topology: v5e:2x2
jax: 0.10.0
libtpu: 0.0.40
codegen_flags: <defaults>
</compile_context>

<pallas_src>
import time
from functools import partial

import jax
import jax.numpy as jnp
from jax import lax
from jax.experimental import pallas as pl
from jax.experimental.pallas import tpu as pltpu

TD_MAX = 1024   # D-chunk (lane) tile: multiple of 128
TB_MAX = 256    # max batch rows per M tile: multiple of 8


def _round_up(x, m):
    return ((x + m - 1) // m) * m


def _batch_tiling(B):
    """Return (B_pad, tB).  tB is a multiple of 8, <= TB_MAX, divides B_pad,
    and when the batch allows we force >= 2 M tiles so the 'parallel' grid
    axis keeps both TensorCores busy on v7x."""
    b8 = _round_up(max(B, 1), 8)
    if b8 <= 8:
        return 8, 8
    if b8 <= 2 * TB_MAX:
        b_pad = _round_up(b8, 16)
        return b_pad, b_pad // 2          # exactly 2 M tiles
    b_pad = _round_up(B, TB_MAX)
    return b_pad, TB_MAX


def _d_tiling(D):
    """Return (D_pad, tD): single chunk if D fits, else TD_MAX chunks."""
    if D <= TD_MAX:
        d_pad = _round_up(D, 128)
        return d_pad, d_pad
    d_pad = _round_up(D, TD_MAX)
    return d_pad, TD_MAX


# ---------------------------------------------------------------------------
# Fused pipeline kernel
#   grid = (n_m, 2 * n_d)     m: batch tile ("parallel"), s: phase+chunk
#   s in [0, n_d)      : transmitter reduction over D chunks  (z accumulator)
#   s == n_d - 1 (tail): channel: power-norm + AWGN (y -> bf16 VMEM scratch)
#   s in [n_d, 2*n_d)  : receiver output chunk + PSNR SSE partials
# ---------------------------------------------------------------------------
def _pipeline_kernel(x_ref, wtx_ref, btx_ref, wrx_ref, brx_ref, noise_ref,
                     xhat_ref, sse_ref, z_acc, y_bf16, sse_acc, *, n_d, sigma):
    s = pl.program_id(1)

    # ---- phase 0: transmitter  z = x @ W_tx + b_tx  (tiled over D) ----------
    @pl.when(s == 0)
    def _():
        # Bias folded into the accumulator init (saves one VPU pass per step).
        z_acc[...] = jnp.broadcast_to(btx_ref[...], z_acc.shape)

    @pl.when(s < n_d)
    def _():
        # x streamed as bf16 (cast once in the wrapper), f32 accumulation.
        z_acc[...] += jnp.dot(x_ref[...], wtx_ref[...],
                              preferred_element_type=jnp.float32)

    # ---- end of phase 0: channel (per-sample power norm + AWGN), in VMEM ----
    @pl.when(s == n_d - 1)
    def _():
        z = z_acc[...]
        k_dim = z.shape[-1]
        power = jnp.sum(z * z, axis=-1, keepdims=True) * (1.0 / k_dim)
        # All-zero rows stay zero (0 * rsqrt(eps) == 0) -> epsilon is safe.
        z_norm = z * lax.rsqrt(power + 1e-12)
        y = z_norm + sigma * noise_ref[...]
        # One-time cast of y to bf16 for the receiver matmul LHS.
        y_bf16[...] = y.astype(jnp.bfloat16)

    # ---- phase 1: receiver  xhat = y @ W_rx + b_rx  + PSNR partial sums -----
    @pl.when(s >= n_d)
    def _():
        xhat = (jnp.dot(y_bf16[...], wrx_ref[...],
                        preferred_element_type=jnp.float32)
                + brx_ref[...])
        xhat_ref[...] = xhat                         # lane-dense (tB, tD) store
        # PSNR partials: clamp to [0,1] (matches torch.clamp before metrics);
        # per-row lane reduction, accumulated hierarchically in f32.
        d = (jnp.clip(x_ref[...].astype(jnp.float32), 0.0, 1.0)
             - jnp.clip(xhat, 0.0, 1.0))
        row_sse = jnp.sum(d * d, axis=-1, keepdims=True)

        @pl.when(s == n_d)
        def _():
            sse_acc[...] = row_sse

        @pl.when(s > n_d)
        def _():
            sse_acc[...] += row_sse

    @pl.when(s == 2 * n_d - 1)
    def _():
        sse_ref[...] = sse_acc[...]


# ---------------------------------------------------------------------------
# Jitted wrapper: one fused launch + tiny PSNR finalisation.
# ---------------------------------------------------------------------------
@partial(jax.jit, static_argnames=("sigma", "b_real", "d_real", "tb", "td"))
def _fused_forward(x_pad, w_tx, b_tx, w_rx, b_rx, noise_key, *,
                   sigma, b_real, d_real, tb, td):
    B_pad, D_pad = x_pad.shape
    K = w_tx.shape[1]
    n_m = B_pad // tb
    n_d = D_pad // td

    # AWGN drawn host-side API-wise but inside jit (so it lives on device);
    # only (B_pad, K) floats -> negligible HBM traffic vs. x / weights / xhat.
    noise = jax.random.normal(noise_key, (B_pad, K), jnp.float32)

    kernel = partial(_pipeline_kernel, n_d=n_d, sigma=sigma)

    xhat_pad, sse_rows = pl.pallas_call(
        kernel,
        out_shape=(
            jax.ShapeDtypeStruct((B_pad, D_pad), jnp.float32),   # xhat
            jax.ShapeDtypeStruct((B_pad, 1), jnp.float32),       # per-row SSE
        ),
        grid=(n_m, 2 * n_d),
        in_specs=[
            pl.BlockSpec((tb, td), lambda m, s: (m, s % n_d)),                # x (bf16)
            pl.BlockSpec((td, K), lambda m, s: (jnp.minimum(s, n_d - 1), 0)), # W_tx
            pl.BlockSpec((1, K), lambda m, s: (0, 0)),                        # b_tx
            pl.BlockSpec((K, td), lambda m, s: (0, jnp.maximum(s - n_d, 0))), # W_rx
            pl.BlockSpec((1, td), lambda m, s: (0, jnp.maximum(s - n_d, 0))), # b_rx
            pl.BlockSpec((tb, K), lambda m, s: (m, 0)),                       # noise
        ],
        out_specs=(
            pl.BlockSpec((tb, td), lambda m, s: (m, jnp.maximum(s - n_d, 0))),
            pl.BlockSpec((tb, 1), lambda m, s: (m, 0)),
        ),
        scratch_shapes=[
            pltpu.VMEM((tb, K), jnp.float32),    # z / pre-cast y accumulator
            pltpu.VMEM((tb, K), jnp.bfloat16),   # y (bf16) for receiver matmul
            pltpu.VMEM((tb, 1), jnp.float32),    # per-row SSE accumulator
        ],
        compiler_params=pltpu.CompilerParams(
            dimension_semantics=("parallel", "arbitrary"),
            # Working set ~6 MiB at tD=1024 / tB=256; 48 MiB leaves plenty of
            # headroom and still fits v7x's 64 MiB physical VMEM.
            vmem_limit_bytes=48 * 1024 * 1024,
        ),
    )(x_pad, w_tx, b_tx, w_rx, b_rx, noise)

    # Final (tiny) reduction + log10 fused by XLA around the kernel.
    sse = jnp.sum(sse_rows[:b_real, 0])
    mse = sse / (b_real * d_real)
    psnr = 10.0 * jnp.log10(1.0 / (mse + 1e-12))
    return xhat_pad[:b_real, :d_real], psnr


# ---------------------------------------------------------------------------
# Pipeline (mirrors BasePipeline.forward bookkeeping)
# ---------------------------------------------------------------------------
class PallasBasePipeline:
    def __init__(self, img_shape, latent_dim=128, snr_db=10.0, seed=0):
        self.C, self.H, self.W = img_shape
        self.D = self.C * self.H * self.W
        self.K = latent_dim
        self.snr_db = snr_db
        self.sigma = float(10.0 ** (-snr_db / 20.0))   # sqrt(10^(-snr/10))
        self._statistics = []
        self.D_pad, self.tD = _d_tiling(self.D)

        # Deterministic parameter init (PyTorch-Linear-like uniform bounds).
        key = jax.random.PRNGKey(seed)
        k_tw, k_tb, k_rw, k_rb = jax.random.split(key, 4)
        tx_bound = 1.0 / float(self.D) ** 0.5
        rx_bound = 1.0 / float(self.K) ** 0.5
        w_tx = jax.random.uniform(k_tw, (self.D, self.K), jnp.float32, -tx_bound, tx_bound)
        b_tx = jax.random.uniform(k_tb, (1, self.K), jnp.float32, -tx_bound, tx_bound)
        w_rx = jax.random.uniform(k_rw, (self.K, self.D), jnp.float32, -rx_bound, rx_bound)
        b_rx = jax.random.uniform(k_rb, (1, self.D), jnp.float32, -rx_bound, rx_bound)

        # Zero-pad D to a multiple of tD (no effect on results: padded output
        # columns decode to exactly 0 and padded input columns are 0) and store
        # the MXU operands in bf16; accumulation stays f32 and the channel /
        # PSNR elementwise math is f32 (v5e-safe).
        self.w_tx = jnp.pad(w_tx, ((0, self.D_pad - self.D), (0, 0))).astype(jnp.bfloat16)
        self.b_tx = b_tx
        self.w_rx = jnp.pad(w_rx, ((0, 0), (0, self.D_pad - self.D))).astype(jnp.bfloat16)
        self.b_rx = jnp.pad(b_rx, ((0, 0), (0, self.D_pad - self.D)))

    def reset_statistics(self):
        self._statistics = []

    def forward(self, input_data, noise_key):
        # layout: input_data is NCHW [B, C, H, W]
        diagnostics = {"timings": {}, "size_info": {}}
        B = int(input_data.shape[0])
        # x streamed in bf16: it is read twice in the kernel (tx matmul + PSNR)
        # so this halves the dominant HBM stream.
        x_flat = input_data.reshape(B, self.D).astype(jnp.bfloat16)

        # Pad batch so stores are unmasked full-vreg vst and, when possible,
        # the "parallel" M axis has >= 2 tiles (v7x second TensorCore).
        B_pad, tB = _batch_tiling(B)
        x_pad = jnp.pad(x_flat, ((0, B_pad - B), (0, self.D_pad - self.D)))

        # Single fused launch: transmitter, channel (AWGN), receiver and PSNR
        # partials run in one pallas_call; z / y never touch HBM.
        t0 = time.time()
        xhat_flat, psnr = _fused_forward(
            x_pad, self.w_tx, self.b_tx, self.w_rx, self.b_rx, noise_key,
            sigma=self.sigma, b_real=B, d_real=self.D, tb=tB, td=self.tD)
        jax.block_until_ready(xhat_flat)
        total_time = time.time() - t0   # NOTE: includes JIT compile on 1st call

        # Stages are fused into one kernel, so per-stage host timing is not
        # meaningful; use xprof for per-stage attribution.
        diagnostics["timings"]["transmitter_total"] = 0.0
        diagnostics["timings"]["channel_total"] = 0.0
        diagnostics["timings"]["receiver_total"] = 0.0
        diagnostics["timings"]["total_pipeline_time"] = total_time

        # size_info / cbr bookkeeping (as in BasePipeline.forward)
        total_bits = B * self.K * 32
        diagnostics["size_info"]["total_bits"] = total_bits
        n = B * self.D
        k_elems = (B * self.K) / 2.0
        diagnostics["size_info"]["cbr"] = (k_elems / n) if n > 0 else float("inf")

        diagnostics["psnr"] = float(psnr)
        # TODO(synk): SSIM / MS-SSIM / LPIPS / FID rely on windowed convs or
        # pretrained feature nets with no clean single-kernel Pallas equivalent.
        original_size_bytes = 4 * n
        diagnostics["compression_ratio"] = (
            total_bits / (original_size_bytes * 8) if total_bits > 0 else float("inf"))

        reconstructed = xhat_flat.reshape(B, self.C, self.H, self.W)
        self._statistics.append(diagnostics)
        return reconstructed, diagnostics


# ---------------------------------------------------------------------------
if __name__ == "__main__":
    B, C, H, W = 2, 4, 16, 16
    key = jax.random.PRNGKey(0)
    k_img, k_noise = jax.random.split(key)
    x = jax.random.uniform(k_img, (B, C, H, W), jnp.float32)  # image-like in [0,1]

    pipeline = PallasBasePipeline((C, H, W), latent_dim=128, snr_db=10.0, seed=0)
    reconstructed, diagnostics = pipeline.forward(x, k_noise)
    jax.block_until_ready(reconstructed)

    assert reconstructed.shape == (B, C, H, W)
    assert jnp.isfinite(reconstructed).all()
    assert "psnr" in diagnostics and "cbr" in diagnostics["size_info"]

    # Correctness sanity check vs. a pure-jnp reference at ~zero noise
    # (mirrors the kernel's bf16 operand casts -> tight tolerance).
    pipe_chk = PallasBasePipeline((C, H, W), latent_dim=128, snr_db=200.0, seed=0)
    recon_chk, _ = pipe_chk.forward(x, k_noise)
    x_f = x.reshape(B, -1).astype(jnp.bfloat16).astype(jnp.float32)
    w_tx_f = pipe_chk.w_tx[:pipe_chk.D].astype(jnp.float32)
    z_ref = x_f @ w_tx_f + pipe_chk.b_tx
    pwr = jnp.mean(z_ref * z_ref, axis=-1, keepdims=True)
    y_ref = (z_ref * lax.rsqrt(pwr + 1e-12)).astype(jnp.bfloat16).astype(jnp.float32)
    w_rx_f = pipe_chk.w_rx[:, :pipe_chk.D].astype(jnp.float32)
    xhat_ref = y_ref @ w_rx_f + pipe_chk.b_rx[:, :pipe_chk.D]
    max_err = float(jnp.max(jnp.abs(recon_chk.reshape(B, -1) - xhat_ref)))
    assert jnp.allclose(recon_chk.reshape(B, -1), xhat_ref, atol=5e-2), (
        "max abs err = %f" % max_err)

    print("KERNEL_OK")
</pallas_src>

<mosaic_0001>
module attributes {stable_mosaic.version = 11 : i64} {
  func.func @_pipeline_kernel(%arg0: i32, %arg1: i32, %arg2: memref<8x1024xbf16, #tpu.memory_space<vmem>>, %arg3: memref<1024x128xbf16, #tpu.memory_space<vmem>>, %arg4: memref<1x128xf32, #tpu.memory_space<vmem>>, %arg5: memref<128x1024xbf16, #tpu.memory_space<vmem>>, %arg6: memref<1x1024xf32, #tpu.memory_space<vmem>>, %arg7: memref<8x128xf32, #tpu.memory_space<vmem>>, %arg8: memref<8x1024xf32, #tpu.memory_space<vmem>>, %arg9: memref<8x1xf32, #tpu.memory_space<vmem>>, %arg10: memref<8x128xf32, #tpu.memory_space<vmem>>, %arg11: memref<8x128xbf16, #tpu.memory_space<vmem>>, %arg12: memref<8x1xf32, #tpu.memory_space<vmem>>) attributes {dimension_semantics = [#tpu.dimension_semantics<parallel>, #tpu.dimension_semantics<arbitrary>], iteration_bounds = array<i64: 1, 2>, scalar_prefetch = 0 : i64, scratch_operands = 3 : i64, tpu.core_type = #tpu.core_type<tc>, window_params = [{transform_indices = @transform_0, window_bounds = array<i64: 8, 1024>}, {transform_indices = @transform_1, window_bounds = array<i64: 1024, 128>}, {pipeline_mode = #tpu.pipeline_mode<synchronous>, transform_indices = @transform_2, window_bounds = array<i64: 1, 128>}, {transform_indices = @transform_3, window_bounds = array<i64: 128, 1024>}, {transform_indices = @transform_4, window_bounds = array<i64: 1, 1024>}, {transform_indices = @transform_5, window_bounds = array<i64: 8, 128>}, {transform_indices = @transform_6, window_bounds = array<i64: 8, 1024>}, {transform_indices = @transform_7, window_bounds = array<i64: 8, 1>}]} {
    %c0_i32 = arith.constant 0 : i32
    %0 = arith.cmpi eq, %arg1, %c0_i32 : i32
    %1 = arith.extui %0 : i1 to i32
    %c0_i32_0 = arith.constant 0 : i32
    %2 = arith.cmpi ne, %1, %c0_i32_0 : i32
    scf.if %2 {
      %c0 = arith.constant 0 : index
      %c0_8 = arith.constant 0 : index
      %15 = vector.load %arg4[%c0, %c0_8] : memref<1x128xf32, #tpu.memory_space<vmem>>, vector<1x128xf32>
      %16 = vector.shape_cast %15 : vector<1x128xf32> to vector<1x128xf32>
      %17 = vector.broadcast %16 : vector<1x128xf32> to vector<8x128xf32>
      %c0_9 = arith.constant 0 : index
      %c0_10 = arith.constant 0 : index
      %18 = vector.load %arg10[%c0_9, %c0_10] : memref<8x128xf32, #tpu.memory_space<vmem>>, vector<8x128xf32>
      tpu.vector_store %arg10[%c0_9, %c0_10], %17 {strides = array<i32>} : memref<8x128xf32, #tpu.memory_space<vmem>>, vector<8x128xf32>,
    } else {
    }
    %c1_i32 = arith.constant 1 : i32
    %3 = arith.cmpi slt, %arg1, %c1_i32 : i32
    %4 = arith.extui %3 : i1 to i32
    %c0_i32_1 = arith.constant 0 : i32
    %5 = arith.cmpi ne, %4, %c0_i32_1 : i32
    scf.if %5 {
      %c0 = arith.constant 0 : index
      %c0_8 = arith.constant 0 : index
      %15 = vector.load %arg10[%c0, %c0_8] : memref<8x128xf32, #tpu.memory_space<vmem>>, vector<8x128xf32>
      %c0_9 = arith.constant 0 : index
      %c0_10 = arith.constant 0 : index
      %16 = vector.load %arg2[%c0_9, %c0_10] : memref<8x1024xbf16, #tpu.memory_space<vmem>>, vector<8x1024xbf16>
      %c0_11 = arith.constant 0 : index
      %c0_12 = arith.constant 0 : index
      %17 = vector.load %arg3[%c0_11, %c0_12] : memref<1024x128xbf16, #tpu.memory_space<vmem>>, vector<1024x128xbf16>
      %cst = arith.constant dense<0.000000e+00> : vector<8x128xf32>
      %18 = tpu.matmul %16, %17, %cst {dimension_numbers = #tpu.dot_dimension_numbers<[1], [0], [0], [1], [0, 0, 1, 1], [], []>} : vector<8x1024xbf16>, vector<1024x128xbf16>, vector<8x128xf32> -> vector<8x128xf32>
      %19 = arith.addf %15, %18 : vector<8x128xf32>
      %c0_13 = arith.constant 0 : index
      %c0_14 = arith.constant 0 : index
      %20 = vector.load %arg10[%c0_13, %c0_14] : memref<8x128xf32, #tpu.memory_space<vmem>>, vector<8x128xf32>
      tpu.vector_store %arg10[%c0_13, %c0_14], %19 {strides = array<i32>} : memref<8x128xf32, #tpu.memory_space<vmem>>, vector<8x128xf32>,
    } else {
    }
    %c0_i32_2 = arith.constant 0 : i32
    %6 = arith.cmpi eq, %arg1, %c0_i32_2 : i32
    %7 = arith.extui %6 : i1 to i32
    %c0_i32_3 = arith.constant 0 : i32
    %8 = arith.cmpi ne, %7, %c0_i32_3 : i32
    scf.if %8 {
      %c0 = arith.constant 0 : index
      %c0_8 = arith.constant 0 : index
      %15 = vector.load %arg10[%c0, %c0_8] : memref<8x128xf32, #tpu.memory_space<vmem>>, vector<8x128xf32>
      %16 = arith.mulf %15, %15 : vector<8x128xf32>
      %cst = arith.constant dense<0.000000e+00> : vector<8xf32>
      %17 = vector.multi_reduction <add>, %16, %cst [1] : vector<8x128xf32> to vector<8xf32>
      %18 = vector.shape_cast %17 : vector<8xf32> to vector<8x1xf32>
      %cst_9 = arith.constant 7.812500e-03 : f32
      %19 = vector.broadcast %cst_9 : f32 to vector<8x1xf32>
      %20 = arith.mulf %18, %19 : vector<8x1xf32>
      %cst_10 = arith.constant 9.99999996E-13 : f32
      %21 = vector.broadcast %cst_10 : f32 to vector<8x1xf32>
      %22 = arith.addf %20, %21 : vector<8x1xf32>
      %23 = math.rsqrt %22 : vector<8x1xf32>
      %24 = vector.broadcast %23 : vector<8x1xf32> to vector<8x128xf32>
      %25 = arith.mulf %15, %24 : vector<8x128xf32>
      %c0_11 = arith.constant 0 : index
      %c0_12 = arith.constant 0 : index
      %26 = vector.load %arg7[%c0_11, %c0_12] : memref<8x128xf32, #tpu.memory_space<vmem>>, vector<8x128xf32>
      %cst_13 = arith.constant 0.316227764 : f32
      %27 = vector.broadcast %cst_13 : f32 to vector<8x128xf32>
      %28 = arith.mulf %27, %26 : vector<8x128xf32>
      %29 = arith.addf %25, %28 : vector<8x128xf32>
      %30 = arith.truncf %29 : vector<8x128xf32> to vector<8x128xbf16>
      %c0_14 = arith.constant 0 : index
      %c0_15 = arith.constant 0 : index
      %31 = vector.load %arg11[%c0_14, %c0_15] : memref<8x128xbf16, #tpu.memory_space<vmem>>, vector<8x128xbf16>
      tpu.vector_store %arg11[%c0_14, %c0_15], %30 {strides = array<i32>} : memref<8x128xbf16, #tpu.memory_space<vmem>>, vector<8x128xbf16>,
    } else {
    }
    %c1_i32_4 = arith.constant 1 : i32
    %9 = arith.cmpi sge, %arg1, %c1_i32_4 : i32
    %10 = arith.extui %9 : i1 to i32
    %c0_i32_5 = arith.constant 0 : i32
    %11 = arith.cmpi ne, %10, %c0_i32_5 : i32
    scf.if %11 {
      %c0 = arith.constant 0 : index
      %c0_8 = arith.constant 0 : index
      %15 = vector.load %arg11[%c0, %c0_8] : memref<8x128xbf16, #tpu.memory_space<vmem>>, vector<8x128xbf16>
      %c0_9 = arith.constant 0 : index
      %c0_10 = arith.constant 0 : index
      %16 = vector.load %arg5[%c0_9, %c0_10] : memref<128x1024xbf16, #tpu.memory_space<vmem>>, vector<128x1024xbf16>
      %cst = arith.constant dense<0.000000e+00> : vector<8x1024xf32>
      %17 = tpu.matmul %15, %16, %cst {dimension_numbers = #tpu.dot_dimension_numbers<[1], [0], [0], [1], [0, 0, 1, 1], [], []>} : vector<8x128xbf16>, vector<128x1024xbf16>, vector<8x1024xf32> -> vector<8x1024xf32>
      %c0_11 = arith.constant 0 : index
      %c0_12 = arith.constant 0 : index
      %18 = vector.load %arg6[%c0_11, %c0_12] : memref<1x1024xf32, #tpu.memory_space<vmem>>, vector<1x1024xf32>
      %19 = vector.broadcast %18 : vector<1x1024xf32> to vector<8x1024xf32>
      %20 = arith.addf %17, %19 : vector<8x1024xf32>
      %c0_13 = arith.constant 0 : index
      %c0_14 = arith.constant 0 : index
      %21 = vector.load %arg8[%c0_13, %c0_14] : memref<8x1024xf32, #tpu.memory_space<vmem>>, vector<8x1024xf32>
      tpu.vector_store %arg8[%c0_13, %c0_14], %20 {strides = array<i32>} : memref<8x1024xf32, #tpu.memory_space<vmem>>, vector<8x1024xf32>,
      %c0_15 = arith.constant 0 : index
      %c0_16 = arith.constant 0 : index
      %22 = vector.load %arg2[%c0_15, %c0_16] : memref<8x1024xbf16, #tpu.memory_space<vmem>>, vector<8x1024xbf16>
      %23 = arith.extf %22 : vector<8x1024xbf16> to vector<8x1024xf32>
      %cst_17 = arith.constant 0.000000e+00 : f32
      %cst_18 = arith.constant 1.000000e+00 : f32
      %24 = vector.broadcast %cst_17 : f32 to vector<8x1024xf32>
      %25 = arith.maximumf %24, %23 : vector<8x1024xf32>
      %26 = vector.broadcast %cst_18 : f32 to vector<8x1024xf32>
      %27 = arith.minimumf %26, %25 : vector<8x1024xf32>
      %cst_19 = arith.constant 0.000000e+00 : f32
      %cst_20 = arith.constant 1.000000e+00 : f32
      %28 = vector.broadcast %cst_19 : f32 to vector<8x1024xf32>
      %29 = arith.maximumf %28, %20 : vector<8x1024xf32>
      %30 = vector.broadcast %cst_20 : f32 to vector<8x1024xf32>
      %31 = arith.minimumf %30, %29 : vector<8x1024xf32>
      %32 = arith.subf %27, %31 : vector<8x1024xf32>
      %33 = arith.mulf %32, %32 : vector<8x1024xf32>
      %cst_21 = arith.constant dense<0.000000e+00> : vector<8xf32>
      %34 = vector.multi_reduction <add>, %33, %cst_21 [1] : vector<8x1024xf32> to vector<8xf32>
      %35 = vector.shape_cast %34 : vector<8xf32> to vector<8x1xf32>
      %c1_i32_22 = arith.constant 1 : i32
      %36 = arith.cmpi eq, %arg1, %c1_i32_22 : i32
      %37 = arith.extui %36 : i1 to i32
      %c0_i32_23 = arith.constant 0 : i32
      %38 = arith.cmpi ne, %37, %c0_i32_23 : i32
      scf.if %38 {
        %c0_26 = arith.constant 0 : index
        %c0_27 = arith.constant 0 : index
        %42 = vector.load %arg12[%c0_26, %c0_27] : memref<8x1xf32, #tpu.memory_space<vmem>>, vector<8x1xf32>
        tpu.vector_store %arg12[%c0_26, %c0_27], %35 {strides = array<i32>} : memref<8x1xf32, #tpu.memory_space<vmem>>, vector<8x1xf32>,
      } else {
      }
      %c1_i32_24 = arith.constant 1 : i32
      %39 = arith.cmpi sgt, %arg1, %c1_i32_24 : i32
      %40 = arith.extui %39 : i1 to i32
      %c0_i32_25 = arith.constant 0 : i32
      %41 = arith.cmpi ne, %40, %c0_i32_25 : i32
      scf.if %41 {
        %c0_26 = arith.constant 0 : index
        %c0_27 = arith.constant 0 : index
        %42 = vector.load %arg12[%c0_26, %c0_27] : memref<8x1xf32, #tpu.memory_space<vmem>>, vector<8x1xf32>
        %43 = arith.addf %42, %35 : vector<8x1xf32>
        %c0_28 = arith.constant 0 : index
        %c0_29 = arith.constant 0 : index
        %44 = vector.load %arg12[%c0_28, %c0_29] : memref<8x1xf32, #tpu.memory_space<vmem>>, vector<8x1xf32>
        tpu.vector_store %arg12[%c0_28, %c0_29], %43 {strides = array<i32>} : memref<8x1xf32, #tpu.memory_space<vmem>>, vector<8x1xf32>,
      } else {
      }
    } else {
    }
    %c1_i32_6 = arith.constant 1 : i32
    %12 = arith.cmpi eq, %arg1, %c1_i32_6 : i32
    %13 = arith.extui %12 : i1 to i32
    %c0_i32_7 = arith.constant 0 : i32
    %14 = arith.cmpi ne, %13, %c0_i32_7 : i32
    scf.if %14 {
      %c0 = arith.constant 0 : index
      %c0_8 = arith.constant 0 : index
      %15 = vector.load %arg12[%c0, %c0_8] : memref<8x1xf32, #tpu.memory_space<vmem>>, vector<8x1xf32>
      %c0_9 = arith.constant 0 : index
      %c0_10 = arith.constant 0 : index
      %16 = vector.load %arg9[%c0_9, %c0_10] : memref<8x1xf32, #tpu.memory_space<vmem>>, vector<8x1xf32>
      tpu.vector_store %arg9[%c0_9, %c0_10], %15 {strides = array<i32>} : memref<8x1xf32, #tpu.memory_space<vmem>>, vector<8x1xf32>,
    } else {
    }
    return
  }
  func.func @transform_0(%arg0: i32, %arg1: i32) -> (i32, i32) {
    %c1_i32 = arith.constant 1 : i32
    %c0_i32 = arith.constant 0 : i32
    %0 = arith.cmpi eq, %c1_i32, %c0_i32 : i32
    %c1_i32_0 = arith.constant 1 : i32
    %1 = arith.select %0, %c1_i32_0, %c1_i32 : i32
    %2 = arith.remsi %arg1, %1 : i32
    %c0_i32_1 = arith.constant 0 : i32
    %3 = arith.cmpi ne, %2, %c0_i32_1 : i32
    %c0_i32_2 = arith.constant 0 : i32
    %4 = arith.cmpi slt, %2, %c0_i32_2 : i32
    %c0_i32_3 = arith.constant 0 : i32
    %5 = arith.cmpi slt, %1, %c0_i32_3 : i32
    %6 = arith.xori %4, %5 : i1
    %7 = arith.andi %6, %3 : i1
    %8 = arith.addi %2, %1 : i32
    %9 = arith.select %7, %8, %2 : i32
    %c0_i32_4 = arith.constant 0 : i32
    return %arg0, %9 : i32, i32
  }
  func.func @transform_1(%arg0: i32, %arg1: i32) -> (i32, i32) {
    %c0_i32 = arith.constant 0 : i32
    %0 = arith.minsi %arg1, %c0_i32 : i32
    %c0_i32_0 = arith.constant 0 : i32
    %c0_i32_1 = arith.constant 0 : i32
    return %0, %c0_i32_0 : i32, i32
  }
  func.func @transform_2(%arg0: i32, %arg1: i32) -> (i32, i32) {
    %c0_i32 = arith.constant 0 : i32
    %c0_i32_0 = arith.constant 0 : i32
    %c0_i32_1 = arith.constant 0 : i32
    return %c0_i32, %c0_i32_0 : i32, i32
  }
  func.func @transform_3(%arg0: i32, %arg1: i32) -> (i32, i32) {
    %c1_i32 = arith.constant 1 : i32
    %0 = arith.subi %arg1, %c1_i32 : i32
    %c0_i32 = arith.constant 0 : i32
    %1 = arith.maxsi %0, %c0_i32 : i32
    %c0_i32_0 = arith.constant 0 : i32
    %c0_i32_1 = arith.constant 0 : i32
    return %c0_i32_0, %1 : i32, i32
  }
  func.func @transform_4(%arg0: i32, %arg1: i32) -> (i32, i32) {
    %c1_i32 = arith.constant 1 : i32
    %0 = arith.subi %arg1, %c1_i32 : i32
    %c0_i32 = arith.constant 0 : i32
    %1 = arith.maxsi %0, %c0_i32 : i32
    %c0_i32_0 = arith.constant 0 : i32
    %c0_i32_1 = arith.constant 0 : i32
    return %c0_i32_0, %1 : i32, i32
  }
  func.func @transform_5(%arg0: i32, %arg1: i32) -> (i32, i32) {
    %c0_i32 = arith.constant 0 : i32
    %c0_i32_0 = arith.constant 0 : i32
    return %arg0, %c0_i32 : i32, i32
  }
  func.func @transform_6(%arg0: i32, %arg1: i32) -> (i32, i32) {
    %c1_i32 = arith.constant 1 : i32
    %0 = arith.subi %arg1, %c1_i32 : i32
    %c0_i32 = arith.constant 0 : i32
    %1 = arith.maxsi %0, %c0_i32 : i32
    %c0_i32_0 = arith.constant 0 : i32
    return %arg0, %1 : i32, i32
  }
  func.func @transform_7(%arg0: i32, %arg1: i32) -> (i32, i32) {
    %c0_i32 = arith.constant 0 : i32
    %c0_i32_0 = arith.constant 0 : i32
    return %arg0, %c0_i32 : i32, i32
  }
}

</mosaic_0001>

<bundles_post_ra>
// kernel: _fused_forward.1
= control target key start
LH: loop header
LB: loop body
LE: loop exit
PB: predicated region body
PF: predicated region fallthrough
CT: control target
= control target key end

     0   :  { %13 = vsyncpa [#allocation6], 0  ;;  %s3382_s0 = inlined_call_operand.hbm [shape: bf16[8,1024], index: 0, kind: input, shape index: {}]   ;;  %s3383_s1 = inlined_call_operand.hbm [shape: bf16[1024,128], index: 1, kind: input, shape index: {}]   ;;  %s3384_s2 = inlined_call_operand.vmem [shape: f32[1,128], index: 2, kind: input, shape index: {}]   ;;  %s3385_s3 = inlined_call_operand.hbm [shape: bf16[128,1024], index: 3, kind: input, shape index: {}]   ;;  %s3386_s4 = inlined_call_operand.vmem [shape: f32[1,1024], index: 4, kind: input, shape index: {}]   ;;  %s3387_s5 = inlined_call_operand.vmem [shape: f32[8,128], index: 5, kind: input, shape index: {}]   ;;  %s3388_s6 = inlined_call_operand.vmem [shape: f32[8,1024], index: 6, kind: output, shape index: {0}]   ;;  %s3389_s7 = inlined_call_operand.vmem [shape: f32[8,1], index: 7, kind: output, shape index: {1}]  }
   0x1   :  { %14 = vsyncpa [#allocation8], 0 }
   0x2   :  { %16 = vsyncpa [#allocation8 + $0x1], 0  ;;  %s2973_s24 = smov 0   ;;  %s2975_s25 = smov 0  }
   0x3   :  { %s2977_s26 = smov 0   ;;  %s2979_s27 = smov 0  }
   0x4   :  { %s2981_s28 = smov 0   ;;  %s2983_s29 = smov 0  }
   0x5   :  { %s2985_s30 = smov 0  }
   0x6 LB: > { %s31_s8 = sadd.s32 1, %s2920_s29  ;;  %p2896_p1 = scmp.ne.s32.totalorder %s2912_s27, 0  ;;  %s2924_s30 = sphi %s2985_s30, %s22_s30   ;;  %s2920_s29 = sphi %s2983_s29, %s3398_s29   ;;  %s2916_s28 = sphi %s2981_s28, %s3397_s28   ;;  %s2912_s27 = sphi %s2979_s27, %s3372_s27   ;;  %s2908_s26 = sphi %s2977_s26, %s3396_s26   ;;  %s2904_s25 = sphi %s2975_s25, %s3367_s25   ;;  %s2900_s24 = sphi %s2973_s24, %s3395_s24  }
   0x7   : > { %p32_p0 = scmp.ge.s32.totalorder %s31_s8, 2  ;;  %p79_p2 = scmp.eq.s32.totalorder %s2924_s30, 0 }
   0x8   : > { %p2676_p4 = scmp.lt.s32.totalorder %s2924_s30, 2  ;;  %s304_s9 = sand.u32 1, %s2924_s30  }
   0x9   : > { %s3400_s8 = smov (%p32_p0, %s31_s8), 0  ;;  %p80_p3 = por %p2896_p1, %p79_p2 }
   0xa   : > { %s2926_s10 = smov [#allocation7]   ;;  %s316_s14 = sshll.u32 %s3383_s1, 4  ;;  %s317_s14 = int_to_ptr.hbm [resolvable:$true] %s316_s14 }
   0xb   : > { %s318_s11 = sshll.u32 %s2926_s10, 4  ;;  %p3022_p5 = pnand %p2676_p4, %p80_p3  ;;  %s319_s11 = int_to_ptr.vmem [resolvable:$true] %s318_s11 }
   0xc   : > { %s3026_s16 = scalar_lea.sflag [#allocation8], %s304_s9  ;;  %s2758_s17 = sshra.s32 %s317_s14, 4  ;;  %s2759_s17 = int_to_ptr.hbm [resolvable:$true] %s2758_s17 }
   0xd   : > { %s2760_s18 = scalar_lea.hbm %s2759_s17, 512  ;;  %p2762_p7 = pneg %p3022_p5 }
   0xe   : > { %p2761_p6 = scmp.ne.s32.totalorder %s2759_s17, %s2760_s18  ;;  %s2765_s21 = scalar_lea.hbm %s3383_s1, 512 }
   0xf   : > { %p2767_p10 = scmp.lt.s32.totalorder %s2765_s21, %s2760_s18 }
  0x10   : > { %p2763_p8 = pnand %p2762_p7, %p2761_p6 }
  0x12   : > { %p2764_p9 = pneg %p2763_p8 }
  0x14   : > { %p2769_p11 = pnand %p2767_p10, %p2764_p9 }
  0x16   : > { %2772 = shalt.err (!%p2769_p11)
}
  0x17   : > { %s2927_s22 = smov 64   ;;  %s2928_s23 = smov 4  }
  0x18   : > { %2671 = dma.hbm_to_vmem [thread:$0]  (!%p3022_p5), %s317_s14, 8192, %s319_s11, %s3026_s16, %s2927_s22, %s2927_s22, %s2928_s23  }
  0x19   : > { %s1976_s9 = sadd.s32 4294967295, %s2924_s30   ;;  %p84_p12 = scmp.ne.s32.totalorder %s2912_s27, %s2908_s26 }
  0x1a   : > { %p3041_p13 = scmp.eq.s32.totalorder %s1976_s9, 0  ;;  %p137_p0 = scmp.ne.s32.totalorder %s2904_s25, %s2900_s24 }
  0x1b   : > { %p1984_p1 = scmp.ge.s32.totalorder %s2924_s30, 1  ;;  %p266_p5 = scmp.lt.s32.totalorder %s2924_s30, 3 }
  0x1c   : > { %p3050_p3 = por %p3041_p13, %p84_p12  ;;  %p3057_p6 = por %p137_p0, %p3041_p13 }
  0x1d   : > { %p3061_p7 = pnand %p1984_p1, %p266_p5  ;;  %s281_s24 = sshll.u32 %s3382_s0, 4  ;;  %s282_s24 = int_to_ptr.hbm [resolvable:$true] %s281_s24 }
  0x1e   : > { %s2929_s15 = smov [#allocation5]   ;;  %p2897_p10 = scmp.ne.s32.totalorder %s2904_s25, 0 }
  0x1f   : > { %p2664_p8 = pneg %p3061_p7  ;;  %s283_s17 = sshll.u32 %s2929_s15, 4  ;;  %s284_s17 = int_to_ptr.vmem [resolvable:$true] %s283_s17 }
  0x20   : > { %p133_p11 = por %p2897_p10, %p79_p2  ;;  %s2930_s18 = smov [#allocation9]  }
  0x21   : > { %p2665_p9 = pnand %p2664_p8, %p3041_p13  ;;  %s343_s19 = sshll.u32 %s2930_s18, 4  ;;  %s344_s19 = int_to_ptr.vmem [resolvable:$true] %s343_s19 }
  0x22   : > { %s341_s22 = sshll.u32 %s3385_s3, 4  ;;  %p2672_p12 = pnand %p2676_p4, %p133_p11  ;;  %s342_s22 = int_to_ptr.hbm [resolvable:$true] %s341_s22 }
  0x23   : > { %2667 = dma.hbm_to_vmem [thread:$0]  (!%p2665_p9), %s282_s24, 512, %s284_s17, [#allocation6]  }
  0x24   : > { %s2818_s23 = sshra.s32 %s342_s22, 4  ;;  %p2822_p1 = pneg %p2672_p12  ;;  %s2819_s23 = int_to_ptr.hbm [resolvable:$true] %s2818_s23 }
  0x25   : > { %s2820_s13 = scalar_lea.hbm %s2819_s23, 512  ;;  %p2826_p2 = scmp.lt.s32.totalorder %s2819_s23, %s3385_s3 }
  0x26   : > { %p2821_p0 = scmp.ne.s32.totalorder %s2819_s23, %s2820_s13 }
  0x28   : > { %p2823_p5 = pnand %p2822_p1, %p2821_p0 }
  0x2a   : > { %p2824_p8 = pneg %p2823_p5 }
  0x2c   : > { %p2829_p9 = pnand %p2826_p2, %p2824_p8 }
  0x2e   : > { %2832 = shalt.err (!%p2829_p9)
}
  0x2f   : > { %s2931_s15 = smov 512   ;;  %s2932_s17 = smov 32  }
  0x30   : > { %2674 = dma.hbm_to_vmem [thread:$0]  (!%p2672_p12), %s342_s22, 8192, %s344_s19, %s3026_s16, %s2931_s15, %s2931_s15, %s2932_s17  }
  0x31   : > { %369 = sbr.rel (%p3061_p7) target bundleno = 801 (0x321), region = 44 }
  0x36   : > { %2885 = dma.done.wait (%p3041_p13), [#allocation6], 512  }
  0x37   : > { %2887 = vsyncadd (%p3041_p13), [#allocation6], 4294966784  ;;  %s376_s18 = sand.u32 1, %s1976_s9   ;;  %s378_s20 = sand.u32 1, %s2912_s27  }
  0x38   : > { %s1997_s21 = sshll.u32 %s378_s20, 9  ;;  %s377_s23 = scalar_lea.sflag [#allocation8], %s376_s18 }
  0x39   : > { %s3093_s13 = scalar_lea.vmem [#allocation7], %s1997_s21 }
  0x3a   : > { %2889 = dma.done.wait (%p3050_p3), %s377_s23, 8192  }
  0x3b   : > { %2891 = vsyncadd (%p3050_p3), %s377_s23, 4294959104  ;;  %s388_s16 = sand.u32 1, %s2904_s25  }
  0x3c   : > { %s1998_s10 = sshll.u32 %s388_s16, 9 }
  0x3d   : > { %s3100_s11 = scalar_lea.vmem [#allocation9], %s1998_s10 }
  0x3e   : > { %2893 = dma.done.wait (%p3057_p6), %s377_s23, 8192  }
  0x3f   : > { %2895 = vsyncadd (%p3057_p6), %s377_s23, 4294959104  ;;  %s1999_s9 = sadd.s32 4294967295, %s2916_s28  ;;  %p2004_p3 = scmp.ne.s32.totalorder %s2916_s28, 0 }
  0x40   : > { %p457_p4 = scmp.gt.s32.totalorder %s1999_s9, 0 }
  0x42   : > { %s3402_s9 = smov (!%p457_p4, %s1999_s9), 0 }
  0x43   : > { %s2000_s19 = sshll.u32 %s3402_s9, 3 }
  0x44   : > { %p460_p13 = scmp.lt.s32.totalorder %s2000_s19, 7  ;;  %494 = sbr.rel (%p2004_p3) target bundleno = 75 (0x4b), region = 60 }
  0x46   : > { %s3404_s19 = smov (!%p460_p13, %s2000_s19), 7 }
  0x47   : > { %s462_s14 = scalar_lea.vmem %s3386_s4, %s3404_s19  ;;  %s2003_s24 = sshll.u32 %s3404_s19, 3 }
  0x48   : > { %s3117_s26 = scalar_lea.vmem %s3388_s6, %s2003_s24 }
  0x49   : > { %v2755_v0 = vld [vmem:[%s3384_s2] ss:$0 sm:$0xff] }
  0x4a   : > { %499 = vst [vmem:[#allocation2] sm:$0xff] %v2755_v0 }
  0x4b PF: > { %p2005_p6 = scmp.ge.s32.totalorder %s2916_s28, 1 }
  0x4d   : > { %503 = sbr.rel (%p2005_p6) target bundleno = 289 (0x121), region = 64 }
  0x52   : > { %v2535_v1 = vld [vmem:[%s3093_s13 + $0x38] sm:$0xff]  ;;  %v2534_v5 = vld [vmem:[%s3093_s13 + $0x30] sm:$0xff]  ;;  %v2533_v9 = vld [vmem:[%s3093_s13 + $0x28] sm:$0xff] }
  0x53   : > { %v2543_v2 = vld [vmem:[%s3093_s13 + $0x78] sm:$0xff]  ;;  %1049 = vmatpush.bf16.msra.mxu0 %v2535_v1  ;;  %v2542_v6 = vld [vmem:[%s3093_s13 + $0x70] sm:$0xff]  ;;  %v2541_v10 = vld [vmem:[%s3093_s13 + $0x68] sm:$0xff] }
  0x54   : > { %v2551_v3 = vld [vmem:[%s3093_s13 + $0xb8] sm:$0xff]  ;;  %1062 = vmatpush.bf16.msra.mxu1 %v2543_v2  ;;  %v2550_v7 = vld [vmem:[%s3093_s13 + $0xb0] sm:$0xff]  ;;  %v2549_v11 = vld [vmem:[%s3093_s13 + $0xa8] sm:$0xff] }
  0x55   : > { %v2559_v4 = vld [vmem:[%s3093_s13 + $0xf8] sm:$0xff]  ;;  %1075 = vmatpush.bf16.msra.mxu2 %v2551_v3  ;;  %v2558_v8 = vld [vmem:[%s3093_s13 + $0xf0] sm:$0xff]  ;;  %v2557_v12 = vld [vmem:[%s3093_s13 + $0xe8] sm:$0xff] }
  0x56   : > { %1088 = vmatpush.bf16.msra.mxu3 %v2559_v4  ;;  %v2532_v13 = vld [vmem:[%s3093_s13 + $0x20] sm:$0xff]  ;;  %v2531_v17 = vld [vmem:[%s3093_s13 + $0x18] sm:$0xff]  ;;  %v2530_v21 = vld [vmem:[%s3093_s13 + $0x10] sm:$0xff] }
  0x57   : > { %1050 = vmatpush.bf16.msra.mxu0 %v2534_v5  ;;  %v2540_v14 = vld [vmem:[%s3093_s13 + $0x60] sm:$0xff]  ;;  %v2539_v18 = vld [vmem:[%s3093_s13 + $0x58] sm:$0xff]  ;;  %v2538_v22 = vld [vmem:[%s3093_s13 + $0x50] sm:$0xff] }
  0x58   : > { %1063 = vmatpush.bf16.msra.mxu1 %v2542_v6  ;;  %v2548_v15 = vld [vmem:[%s3093_s13 + $0xa0] sm:$0xff]  ;;  %v2547_v19 = vld [vmem:[%s3093_s13 + $0x98] sm:$0xff]  ;;  %v2546_v23 = vld [vmem:[%s3093_s13 + $0x90] sm:$0xff] }
  0x59   : > { %1076 = vmatpush.bf16.msra.mxu2 %v2550_v7  ;;  %v2556_v16 = vld [vmem:[%s3093_s13 + $0xe0] sm:$0xff]  ;;  %v2555_v20 = vld [vmem:[%s3093_s13 + $0xd8] sm:$0xff]  ;;  %v2554_v24 = vld [vmem:[%s3093_s13 + $0xd0] sm:$0xff] }
  0x5a   : > { %1089 = vmatpush.bf16.msra.mxu3 %v2558_v8  ;;  %v2529_v25 = vld [vmem:[%s3093_s13 + $0x8] sm:$0xff]  ;;  %v505_v30 = vld [vmem:[#allocation5] sm:$0xff]  ;;  %v2567_v39 = vld [vmem:[%s3093_s13 + $0x138] sm:$0xff] }
  0x5b   : > { %1051 = vmatpush.bf16.msra.mxu0 %v2533_v9  ;;  %v2537_v26 = vld [vmem:[%s3093_s13 + $0x48] sm:$0xff]  ;;  %v2528_v31 = vld [vmem:[%s3093_s13] sm:$0xff]  ;;  %v641_v37 = vunpack.c.l.b16 %v505_v30  ;;  %v642_v38 = vunpack.c.h.b16 %v505_v30  ;;  %v2575_v40 = vld [vmem:[%s3093_s13 + $0x178] sm:$0xff] }
  0x5c   : > { %1064 = vmatpush.bf16.msra.mxu1 %v2541_v10  ;;  %v2545_v27 = vld [vmem:[%s3093_s13 + $0x88] sm:$0xff]  ;;  %v2536_v32 = vld [vmem:[%s3093_s13 + $0x40] sm:$0xff]  ;;  %v2583_v41 = vld [vmem:[%s3093_s13 + $0x1b8] sm:$0xff] }
  0x5d   : > { %1077 = vmatpush.bf16.msra.mxu2 %v2549_v11  ;;  %v2553_v28 = vld [vmem:[%s3093_s13 + $0xc8] sm:$0xff]  ;;  %v2544_v35 = vld [vmem:[%s3093_s13 + $0x80] sm:$0xff]  ;;  %v2591_v42 = vld [vmem:[%s3093_s13 + $0x1f8] sm:$0xff]  ;;  %v649_v45 = vpack.c.b16 %v641_v37, %v641_v37  ;;  %v650_v46 = vpack.c.b16 %v642_v38, %v642_v38 }
  0x5e   : > { %1090 = vmatpush.bf16.msra.mxu3 %v2557_v12  ;;  %v506_v29 = vld [vmem:[#allocation5 + $0x8] sm:$0xff]  ;;  %v2552_v36 = vld [vmem:[%s3093_s13 + $0xc0] sm:$0xff]  ;;  %v2566_v47 = vld [vmem:[%s3093_s13 + $0x130] sm:$0xff] }
  0x5f   : > { %1052 = vmatpush.bf16.msra.mxu0 %v2532_v13  ;;  %v643_v33 = vunpack.c.l.b16 %v506_v29  ;;  %v644_v34 = vunpack.c.h.b16 %v506_v29  ;;  %v2574_v48 = vld [vmem:[%s3093_s13 + $0x170] sm:$0xff]  ;;  %v2565_v51 = vld [vmem:[%s3093_s13 + $0x128] sm:$0xff]  ;;  %v2564_v55 = vld [vmem:[%s3093_s13 + $0x120] sm:$0xff] }
  0x60   : > { %1065 = vmatpush.bf16.msra.mxu1 %v2540_v14  ;;  %v2582_v49 = vld [vmem:[%s3093_s13 + $0x1b0] sm:$0xff]  ;;  %v2573_v52 = vld [vmem:[%s3093_s13 + $0x168] sm:$0xff]  ;;  %v2572_v56 = vld [vmem:[%s3093_s13 + $0x160] sm:$0xff] }
  0x61   : > { %1078 = vmatpush.bf16.msra.mxu2 %v2548_v15  ;;  %v651_v43 = vpack.c.b16 %v643_v33, %v643_v33  ;;  %v652_v44 = vpack.c.b16 %v644_v34, %v644_v34  ;;  %v2590_v50 = vld [vmem:[%s3093_s13 + $0x1f0] sm:$0xff]  ;;  %v2581_v53 = vld [vmem:[%s3093_s13 + $0x1a8] sm:$0xff]  ;;  %v2580_v57 = vld [vmem:[%s3093_s13 + $0x1a0] sm:$0xff] }
  0x62   : > { %1091 = vmatpush.bf16.msra.mxu3 %v2556_v16  ;;  %v2589_v54 = vld [vmem:[%s3093_s13 + $0x1e8] sm:$0xff]  ;;  %v2588_v58 = vld [vmem:[%s3093_s13 + $0x1e0] sm:$0xff]  ;;  %v2563_v59 = vld [vmem:[%s3093_s13 + $0x118] sm:$0xff] }
  0x63   : > { %1053 = vmatpush.bf16.msra.mxu0 %v2531_v17  ;;  %v2571_v60 = vld [vmem:[%s3093_s13 + $0x158] sm:$0xff]  ;;  %v2562_v63 = vld [vmem:[%s3093_s13 + $0x110] sm:$0xff]  ;;  %v2561_v3 = vld [vmem:[%s3093_s13 + $0x108] sm:$0xff] }
  0x64   : > { %1066 = vmatpush.bf16.msra.mxu1 %v2539_v18  ;;  %v2579_v61 = vld [vmem:[%s3093_s13 + $0x198] sm:$0xff]  ;;  %v2570_v0 = vld [vmem:[%s3093_s13 + $0x150] sm:$0xff]  ;;  %v2569_v4 = vld [vmem:[%s3093_s13 + $0x148] sm:$0xff] }
  0x65   : > { %1079 = vmatpush.bf16.msra.mxu2 %v2547_v19  ;;  %v2587_v62 = vld [vmem:[%s3093_s13 + $0x1d8] sm:$0xff]  ;;  %v2578_v1 = vld [vmem:[%s3093_s13 + $0x190] sm:$0xff]  ;;  %v2577_v6 = vld [vmem:[%s3093_s13 + $0x188] sm:$0xff] }
  0x66   : > { %1092 = vmatpush.bf16.msra.mxu3 %v2555_v20  ;;  %v2586_v2 = vld [vmem:[%s3093_s13 + $0x1d0] sm:$0xff]  ;;  %v2585_v7 = vld [vmem:[%s3093_s13 + $0x1c8] sm:$0xff]  ;;  %v508_v8 = vld [vmem:[#allocation5 + $0x18] sm:$0xff] }
  0x67   : > { %1054 = vmatpush.bf16.msra.mxu0 %v2530_v21  ;;  %v507_v5 = vld [vmem:[#allocation5 + $0x10] sm:$0xff]  ;;  %v2560_v11 = vld [vmem:[%s3093_s13 + $0x100] sm:$0xff]  ;;  %v647_v13 = vunpack.c.l.b16 %v508_v8  ;;  %v648_v14 = vunpack.c.h.b16 %v508_v8 }
  0x68   : > { %1067 = vmatpush.bf16.msra.mxu1 %v2538_v22  ;;  %v645_v9 = vunpack.c.l.b16 %v507_v5  ;;  %v646_v10 = vunpack.c.h.b16 %v507_v5  ;;  %v2568_v12 = vld [vmem:[%s3093_s13 + $0x140] sm:$0xff] }
  0x69   : > { %1080 = vmatpush.bf16.msra.mxu2 %v2546_v23  ;;  %v2576_v15 = vld [vmem:[%s3093_s13 + $0x180] sm:$0xff]  ;;  %v655_v19 = vpack.c.b16 %v647_v13, %v647_v13  ;;  %v656_v20 = vpack.c.b16 %v648_v14, %v648_v14 }
  0x6a   : > { %1093 = vmatpush.bf16.msra.mxu3 %v2554_v24  ;;  %v2584_v16 = vld [vmem:[%s3093_s13 + $0x1c0] sm:$0xff]  ;;  %v653_v17 = vpack.c.b16 %v645_v9, %v645_v9  ;;  %v654_v18 = vpack.c.b16 %v646_v10, %v646_v10 }
  0x6b   : > { %1055 = vmatpush.bf16.msra.mxu0 %v2529_v25 }
  0x6c   : > { %1068 = vmatpush.bf16.msra.mxu1 %v2537_v26 }
  0x6d   : > { %1081 = vmatpush.bf16.msra.mxu2 %v2545_v27 }
  0x6e   : > { %1094 = vmatpush.bf16.msra.mxu3 %v2553_v28 }
  0x6f   : > { %1056 = vmatpush.bf16.msra.mxu0 %v2528_v31 }
  0x70   : > { %1069 = vmatpush.bf16.msra.mxu1 %v2536_v32 }
  0x71   : > { %1082 = vmatpush.bf16.msra.mxu2 %v2544_v35 }
  0x72   : > { %1095 = vmatpush.bf16.msra.mxu3 %v2552_v36  ;;  %1057 = vmatmul.bf16.vlgmr.msra.gmra.mxu0 %v649_v45 }
  0x73   : > { %1101 = vmatpush.bf16.msrb.mxu0 %v2567_v39  ;;  %1070 = vmatmul.bf16.vlgmr.msra.gmra.mxu1 %v650_v46 }
  0x74   : > { %1114 = vmatpush.bf16.msrb.mxu1 %v2575_v40  ;;  %1083 = vmatmul.bf16.vlgmr.msra.gmra.mxu2 %v651_v43 }
  0x75   : > { %1127 = vmatpush.bf16.msrb.mxu2 %v2583_v41  ;;  %1096 = vmatmul.bf16.vlgmr.msra.gmra.mxu3 %v652_v44  ;;  %v504_v41 = vld [vmem:[#allocation2] sm:$0xff] }
  0x76   : > { %1140 = vmatpush.bf16.msrb.mxu3 %v2591_v42 }
  0x77   : > { %1102 = vmatpush.bf16.msrb.mxu0 %v2566_v47 }
  0x78   : > { %1115 = vmatpush.bf16.msrb.mxu1 %v2574_v48 }
  0x79   : > { %1128 = vmatpush.bf16.msrb.mxu2 %v2582_v49 }
  0x7a   : > { %1141 = vmatpush.bf16.msrb.mxu3 %v2590_v50 }
  0x7b   : > { %1103 = vmatpush.bf16.msrb.mxu0 %v2565_v51 }
  0x7c   : > { %1116 = vmatpush.bf16.msrb.mxu1 %v2573_v52 }
  0x7d   : > { %1129 = vmatpush.bf16.msrb.mxu2 %v2581_v53 }
  0x7e   : > { %1142 = vmatpush.bf16.msrb.mxu3 %v2589_v54 }
  0x7f   : > { %1104 = vmatpush.bf16.msrb.mxu0 %v2564_v55 }
  0x80   : > { %1117 = vmatpush.bf16.msrb.mxu1 %v2572_v56 }
  0x81   : > { %1130 = vmatpush.bf16.msrb.mxu2 %v2580_v57 }
  0x82   : > { %1143 = vmatpush.bf16.msrb.mxu3 %v2588_v58 }
  0x83   : > { %1105 = vmatpush.bf16.msrb.mxu0 %v2563_v59 }
  0x84   : > { %1118 = vmatpush.bf16.msrb.mxu1 %v2571_v60 }
  0x85   : > { %1131 = vmatpush.bf16.msrb.mxu2 %v2579_v61 }
  0x86   : > { %1144 = vmatpush.bf16.msrb.mxu3 %v2587_v62 }
  0x87   : > { %1106 = vmatpush.bf16.msrb.mxu0 %v2562_v63 }
  0x88   : > { %1119 = vmatpush.bf16.msrb.mxu1 %v2570_v0 }
  0x89   : > { %1132 = vmatpush.bf16.msrb.mxu2 %v2578_v1 }
  0x8a   : > { %1145 = vmatpush.bf16.msrb.mxu3 %v2586_v2 }
  0x8b   : > { %1107 = vmatpush.bf16.msrb.mxu0 %v2561_v3 }
  0x8c   : > { %1120 = vmatpush.bf16.msrb.mxu1 %v2569_v4 }
  0x8d   : > { %1133 = vmatpush.bf16.msrb.mxu2 %v2577_v6 }
  0x8e   : > { %1146 = vmatpush.bf16.msrb.mxu3 %v2585_v7 }
  0x8f   : > { %1108 = vmatpush.bf16.msrb.mxu0 %v2560_v11 }
  0x90   : > { %1121 = vmatpush.bf16.msrb.mxu1 %v2568_v12 }
  0x91   : > { %1134 = vmatpush.bf16.msrb.mxu2 %v2576_v15 }
  0x92   : > { %1147 = vmatpush.bf16.msrb.mxu3 %v2584_v16  ;;  %1109 = vmatmul.bf16.vlgmr.msrb.gmra.mxu0 %v653_v17 }
  0x93   : > { %1122 = vmatmul.bf16.vlgmr.msrb.gmra.mxu1 %v654_v18 }
  0x94   : > { %1135 = vmatmul.bf16.vlgmr.msrb.gmra.mxu2 %v655_v19 }
  0x95   : > { %1148 = vmatmul.bf16.vlgmr.msrb.gmra.mxu3 %v656_v20 }
  0xef   : > { %v1058_v21 = vpop.f32.mrf.mxu0 }
  0xf0   : > { %v1071_v22 = vpop.f32.mrf.mxu1 }
  0xf1   : > { %v1072_v29 = vadd.f32 %v1071_v22, %v1058_v21 }
  0xf7   : > { %v1084_v23 = vpop.f32.mrf.mxu2  ;;  %v1060_v25 = vpop.f32.mrf.mxu0 }
  0xf8   : > { %v1097_v24 = vpop.f32.mrf.mxu3  ;;  %v1073_v26 = vpop.f32.mrf.mxu1  ;;  %v1085_v30 = vadd.f32 %v1084_v23, %v1072_v29 }
  0xfa   : > { %v1098_v31 = vadd.f32 %v1097_v24, %v1085_v30 }
  0xff   : > { %v1086_v27 = vpop.f32.mrf.mxu2 }
 0x100   : > { %v1099_v28 = vpop.f32.mrf.mxu3 }
 0x10f   : > { %v1110_v32 = vpop.f32.mrf.mxu0 }
 0x110   : > { %v1123_v33 = vpop.f32.mrf.mxu1  ;;  %v1111_v34 = vadd.f32 %v1110_v32, %v1098_v31 }
 0x112   : > { %v1124_v35 = vadd.f32 %v1123_v33, %v1111_v34 }
 0x117   : > { %v1136_v36 = vpop.f32.mrf.mxu2  ;;  %v1112_v39 = vpop.f32.mrf.mxu0 }
 0x118   : > { %v1149_v37 = vpop.f32.mrf.mxu3  ;;  %v1137_v38 = vadd.f32 %v1136_v36, %v1124_v35  ;;  %v1125_v40 = vpop.f32.mrf.mxu1 }
 0x11a   : > { %v1150_v42 = vadd.f32 %v1149_v37, %v1137_v38 }
 0x11c   : > { %v1153_v43 = vadd.f32 %v1150_v42, %v504_v41 }
 0x11e   : > { %1154 = vst [vmem:[#allocation2] sm:$0xff] %v1153_v43 }
 0x11f   : > { %v1138_v44 = vpop.f32.mrf.mxu2 }
 0x120   : > { %v1151_v45 = vpop.f32.mrf.mxu3 }
 0x121 PF: > { %1157 = sbr.rel (%p2004_p3) target bundleno = 442 (0x1ba), region = 68 }
 0x126   : > { %v1158_v46 = vld [vmem:[#allocation2] sm:$0xff] }
 0x127   : > { %v1159_v47 = vmul.f32 %v1158_v46, %v1158_v46  ;;  %v1175_v56 = vld [vmem:[%s3387_s5] sm:$0xff] }
 0x128   : > { %v1176_v58 = vmul.f32 0.31622776, %v1175_v56 }
 0x129   : > { %1160 = vadd.xlane.f32.xlu0 %v1159_v47 }
 0x19c   : > { %v1161_v48 = vpop.xlane.xlu0 %1160 }
 0x19d   : > { %v1162_v49 = vmul.f32 0.0078125, %v1161_v48 }
 0x19f   : > { %v1163_v50 = vadd.f32 1e-12, %v1162_v49 }
 0x1a1   : > { %2756 = vrsqrt.f32 %v1163_v50  ;;  %vm1170_vm1 = vweird.f32 %v1163_v50 }
 0x1a7   : > { %v2757_v51 = vpop.eup %2756 }
 0x1a8   : > { %v1165_v52 = vmul.f32 %v2757_v51, %v1163_v50  ;;  %vm1171_vm0 = vweird.f32 %v2757_v51 }
 0x1a9   : > { %vm1172_vm2 = vmor %vm1170_vm1, %vm1171_vm0 }
 0x1aa   : > { %v1166_v53 = vmul.f32 %v2757_v51, %v1165_v52 }
 0x1ac   : > { %v1167_v54 = vmul.f32 0.5, %v1166_v53 }
 0x1ae   : > { %v1168_v55 = vsub.f32 1.5, %v1167_v54 }
 0x1b0   : > { %v1169_v57 = vmul.f32 %v2757_v51, %v1168_v55 }
 0x1b2   : > { %v1173_v59 = vsel %vm1172_vm2, %v2757_v51, %v1169_v57 }
 0x1b3   : > { %v1174_v60 = vmul.f32 %v1173_v59, %v1158_v46 }
 0x1b5   : > { %v1177_v61 = vadd.f32 %v1176_v58, %v1174_v60 }
 0x1b7   : > { %v1178_v62 = vpack.c.bf16 %v1177_v61, %v1177_v61 }
 0x1b9   : > { %1179 = vst [vmem:[#allocation3] sm:$0xf] %v1178_v62 }
 0x1ba PF: > { %p2263_p7 = scmp.lt.s32.totalorder %s2916_s28, 1 }
 0x1bb   : > { %p2520_p10 = scmp.ne.s32.totalorder (!%p2263_p7), %s2916_s28, 1 }
 0x1bc   : > { %1183 = sbr.rel (%p2263_p7) target bundleno = 792 (0x318), region = 72 }
 0x1c1   : > { %v2490_v63 = vld [vmem:[%s3100_s11 + $0x1c0] sm:$0xf]  ;;  %v2648_v1 = vld [vmem:[%s3100_s11 + $0x1c4] sm:$0xf]  ;;  %v2498_v4 = vld [vmem:[%s3100_s11 + $0x1c8] sm:$0xf] }
 0x1c2   : > { %v2652_v0 = vld [vmem:[%s3100_s11 + $0x1dc] sm:$0xf0]  ;;  %v2492_v3 = vld [vmem:[%s3100_s11 + $0x1e0] sm:$0xf0]  ;;  %v2653_v5 = vld [vmem:[%s3100_s11 + $0x1e4] sm:$0xf0] }
 0x1c3   : > { %v2491_v2 = vor.u32 %v2652_v0, %v2490_v63  ;;  %v2495_v6 = vor.u32 %v2648_v1, %v2492_v3  ;;  %v2499_v7 = vor.u32 %v2653_v5, %v2498_v4  ;;  %v2649_v8 = vld [vmem:[%s3100_s11 + $0x1cc] sm:$0xf]  ;;  %v2458_v10 = vld [vmem:[%s3100_s11 + $0x180] sm:$0xf]  ;;  %v2640_v13 = vld [vmem:[%s3100_s11 + $0x184] sm:$0xf] }
 0x1c4   : > { %v2500_v9 = vld [vmem:[%s3100_s11 + $0x1e8] sm:$0xf0]  ;;  %v2644_v12 = vld [vmem:[%s3100_s11 + $0x19c] sm:$0xf0]  ;;  %v2460_v14 = vld [vmem:[%s3100_s11 + $0x1a0] sm:$0xf0] }
 0x1c5   : > { %1587 = vmatpush.bf16.msra.mxu0 %v2491_v2  ;;  %v2503_v11 = vor.u32 %v2649_v8, %v2500_v9  ;;  %1600 = vmatpush.bf16.msra.mxu1 %v2495_v6  ;;  %v2459_v15 = vor.u32 %v2644_v12, %v2458_v10  ;;  %v2463_v16 = vor.u32 %v2640_v13, %v2460_v14  ;;  %v2466_v17 = vld [vmem:[%s3100_s11 + $0x188] sm:$0xf]  ;;  %v2641_v19 = vld [vmem:[%s3100_s11 + $0x18c] sm:$0xf]  ;;  %v2426_v22 = vld [vmem:[%s3100_s11 + $0x140] sm:$0xf] }
 0x1c6   : > { %1613 = vmatpush.bf16.msra.mxu2 %v2499_v7  ;;  %v2645_v18 = vld [vmem:[%s3100_s11 + $0x1a4] sm:$0xf0]  ;;  %v2468_v21 = vld [vmem:[%s3100_s11 + $0x1a8] sm:$0xf0]  ;;  %v2636_v23 = vld [vmem:[%s3100_s11 + $0x15c] sm:$0xf0] }
 0x1c7   : > { %1626 = vmatpush.bf16.msra.mxu3 %v2503_v11  ;;  %v2467_v20 = vor.u32 %v2645_v18, %v2466_v17  ;;  %v2471_v24 = vor.u32 %v2641_v19, %v2468_v21  ;;  %v2632_v25 = vld [vmem:[%s3100_s11 + $0x144] sm:$0xf]  ;;  %v2434_v27 = vld [vmem:[%s3100_s11 + $0x148] sm:$0xf]  ;;  %v2427_v28 = vor.u32 %v2636_v23, %v2426_v22  ;;  %v2633_v30 = vld [vmem:[%s3100_s11 + $0x14c] sm:$0xf] }
 0x1c8   : > { %v2428_v26 = vld [vmem:[%s3100_s11 + $0x160] sm:$0xf0]  ;;  %v2637_v29 = vld [vmem:[%s3100_s11 + $0x164] sm:$0xf0]  ;;  %v2436_v31 = vld [vmem:[%s3100_s11 + $0x168] sm:$0xf0] }
 0x1c9   : > { %1588 = vmatpush.bf16.msra.mxu0 %v2459_v15  ;;  %1601 = vmatpush.bf16.msra.mxu1 %v2463_v16  ;;  %v2431_v32 = vor.u32 %v2632_v25, %v2428_v26  ;;  %v2435_v33 = vor.u32 %v2637_v29, %v2434_v27  ;;  %v2394_v34 = vld [vmem:[%s3100_s11 + $0x100] sm:$0xf]  ;;  %v2624_v36 = vld [vmem:[%s3100_s11 + $0x104] sm:$0xf]  ;;  %v2439_v37 = vor.u32 %v2633_v30, %v2436_v31  ;;  %v2402_v39 = vld [vmem:[%s3100_s11 + $0x108] sm:$0xf] }
 0x1ca   : > { %1614 = vmatpush.bf16.msra.mxu2 %v2467_v20  ;;  %v2628_v35 = vld [vmem:[%s3100_s11 + $0x11c] sm:$0xf0]  ;;  %v2396_v38 = vld [vmem:[%s3100_s11 + $0x120] sm:$0xf0]  ;;  %v2629_v40 = vld [vmem:[%s3100_s11 + $0x124] sm:$0xf0] }
 0x1cb   : > { %1627 = vmatpush.bf16.msra.mxu3 %v2471_v24  ;;  %v2625_v41 = vld [vmem:[%s3100_s11 + $0x10c] sm:$0xf]  ;;  %v2395_v43 = vor.u32 %v2628_v35, %v2394_v34  ;;  %v2399_v44 = vor.u32 %v2624_v36, %v2396_v38  ;;  %v2403_v45 = vor.u32 %v2629_v40, %v2402_v39  ;;  %v2362_v46 = vld [vmem:[%s3100_s11 + $0xc0] sm:$0xf]  ;;  %v2616_v48 = vld [vmem:[%s3100_s11 + $0xc4] sm:$0xf] }
 0x1cc   : > { %v2404_v42 = vld [vmem:[%s3100_s11 + $0x128] sm:$0xf0]  ;;  %v2620_v47 = vld [vmem:[%s3100_s11 + $0xdc] sm:$0xf0]  ;;  %v2364_v50 = vld [vmem:[%s3100_s11 + $0xe0] sm:$0xf0] }
 0x1cd   : > { %1589 = vmatpush.bf16.msra.mxu0 %v2427_v28  ;;  %1602 = vmatpush.bf16.msra.mxu1 %v2431_v32  ;;  %v2407_v49 = vor.u32 %v2625_v41, %v2404_v42  ;;  %v2370_v51 = vld [vmem:[%s3100_s11 + $0xc8] sm:$0xf]  ;;  %v2617_v53 = vld [vmem:[%s3100_s11 + $0xcc] sm:$0xf]  ;;  %v2363_v55 = vor.u32 %v2620_v47, %v2362_v46  ;;  %v2367_v56 = vor.u32 %v2616_v48, %v2364_v50  ;;  %v2330_v58 = vld [vmem:[%s3100_s11 + $0x80] sm:$0xf] }
 0x1ce   : > { %1615 = vmatpush.bf16.msra.mxu2 %v2435_v33  ;;  %v2621_v52 = vld [vmem:[%s3100_s11 + $0xe4] sm:$0xf0]  ;;  %v2372_v54 = vld [vmem:[%s3100_s11 + $0xe8] sm:$0xf0]  ;;  %v2612_v59 = vld [vmem:[%s3100_s11 + $0x9c] sm:$0xf0] }
 0x1cf   : > { %1628 = vmatpush.bf16.msra.mxu3 %v2439_v37  ;;  %v2371_v57 = vor.u32 %v2621_v52, %v2370_v51  ;;  %v2608_v60 = vld [vmem:[%s3100_s11 + $0x84] sm:$0xf]  ;;  %v2375_v61 = vor.u32 %v2617_v53, %v2372_v54  ;;  %v2338_v63 = vld [vmem:[%s3100_s11 + $0x88] sm:$0xf]  ;;  %v2609_v1 = vld [vmem:[%s3100_s11 + $0x8c] sm:$0xf]  ;;  %v2331_v3 = vor.u32 %v2612_v59, %v2330_v58 }
 0x1d0   : > { %v2332_v62 = vld [vmem:[%s3100_s11 + $0xa0] sm:$0xf0]  ;;  %v2613_v0 = vld [vmem:[%s3100_s11 + $0xa4] sm:$0xf0]  ;;  %v2340_v2 = vld [vmem:[%s3100_s11 + $0xa8] sm:$0xf0] }
 0x1d1   : > { %1590 = vmatpush.bf16.msra.mxu0 %v2395_v43  ;;  %1603 = vmatpush.bf16.msra.mxu1 %v2399_v44  ;;  %v2335_v4 = vor.u32 %v2608_v60, %v2332_v62  ;;  %v2339_v5 = vor.u32 %v2613_v0, %v2338_v63  ;;  %v2298_v6 = vld [vmem:[%s3100_s11 + $0x40] sm:$0xf]  ;;  %v2600_v8 = vld [vmem:[%s3100_s11 + $0x44] sm:$0xf]  ;;  %v2343_v9 = vor.u32 %v2609_v1, %v2340_v2  ;;  %v2306_v11 = vld [vmem:[%s3100_s11 + $0x48] sm:$0xf] }
 0x1d2   : > { %1616 = vmatpush.bf16.msra.mxu2 %v2403_v45  ;;  %v2604_v7 = vld [vmem:[%s3100_s11 + $0x5c] sm:$0xf0]  ;;  %v2300_v10 = vld [vmem:[%s3100_s11 + $0x60] sm:$0xf0]  ;;  %v2605_v12 = vld [vmem:[%s3100_s11 + $0x64] sm:$0xf0] }
 0x1d3   : > { %1629 = vmatpush.bf16.msra.mxu3 %v2407_v49  ;;  %v2601_v13 = vld [vmem:[%s3100_s11 + $0x4c] sm:$0xf]  ;;  %v2299_v15 = vor.u32 %v2604_v7, %v2298_v6  ;;  %v2266_v16 = vld [vmem:[%s3100_s11] sm:$0xf]  ;;  %v2303_v18 = vor.u32 %v2600_v8, %v2300_v10  ;;  %v2307_v19 = vor.u32 %v2605_v12, %v2306_v11  ;;  %v2592_v20 = vld [vmem:[%s3100_s11 + $0x4] sm:$0xf] }
 0x1d4   : > { %v2308_v14 = vld [vmem:[%s3100_s11 + $0x68] sm:$0xf0]  ;;  %v2596_v17 = vld [vmem:[%s3100_s11 + $0x1c] sm:$0xf0]  ;;  %v2268_v21 = vld [vmem:[%s3100_s11 + $0x20] sm:$0xf0] }
 0x1d5   : > { %1591 = vmatpush.bf16.msra.mxu0 %v2363_v55  ;;  %1604 = vmatpush.bf16.msra.mxu1 %v2367_v56  ;;  %v2274_v22 = vld [vmem:[%s3100_s11 + $0x8] sm:$0xf]  ;;  %v2311_v23 = vor.u32 %v2601_v13, %v2308_v14  ;;  %v2593_v25 = vld [vmem:[%s3100_s11 + $0xc] sm:$0xf]  ;;  %v2506_v27 = vld [vmem:[%s3100_s11 + $0x1d0] sm:$0xf]  ;;  %v2267_v30 = vor.u32 %v2596_v17, %v2266_v16  ;;  %v2271_v34 = vor.u32 %v2592_v20, %v2268_v21 }
 0x1d6   : > { %1617 = vmatpush.bf16.msra.mxu2 %v2371_v57  ;;  %v2597_v24 = vld [vmem:[%s3100_s11 + $0x24] sm:$0xf0]  ;;  %v2276_v26 = vld [vmem:[%s3100_s11 + $0x28] sm:$0xf0]  ;;  %v2654_v28 = vld [vmem:[%s3100_s11 + $0x1ec] sm:$0xf0] }
 0x1d7   : > { %1630 = vmatpush.bf16.msra.mxu3 %v2375_v61  ;;  %v2650_v29 = vld [vmem:[%s3100_s11 + $0x1d4] sm:$0xf]  ;;  %v2514_v32 = vld [vmem:[%s3100_s11 + $0x1d8] sm:$0xf]  ;;  %v2275_v35 = vor.u32 %v2597_v24, %v2274_v22  ;;  %v2651_v36 = vld [vmem:[%s3100_s11 + $0x1dc] sm:$0xf]  ;;  %v2279_v38 = vor.u32 %v2593_v25, %v2276_v26  ;;  %v2507_v39 = vor.u32 %v2654_v28, %v2506_v27 }
 0x1d8   : > { %v2508_v31 = vld [vmem:[%s3100_s11 + $0x1f0] sm:$0xf0]  ;;  %v2655_v33 = vld [vmem:[%s3100_s11 + $0x1f4] sm:$0xf0]  ;;  %v2516_v37 = vld [vmem:[%s3100_s11 + $0x1f8] sm:$0xf0] }
 0x1d9   : > { %1592 = vmatpush.bf16.msra.mxu0 %v2331_v3  ;;  %1605 = vmatpush.bf16.msra.mxu1 %v2335_v4  ;;  %v2511_v40 = vor.u32 %v2650_v29, %v2508_v31  ;;  %v2515_v41 = vor.u32 %v2655_v33, %v2514_v32  ;;  %v2474_v42 = vld [vmem:[%s3100_s11 + $0x190] sm:$0xf]  ;;  %v2642_v44 = vld [vmem:[%s3100_s11 + $0x194] sm:$0xf]  ;;  %v2519_v45 = vor.u32 %v2651_v36, %v2516_v37  ;;  %v2482_v47 = vld [vmem:[%s3100_s11 + $0x198] sm:$0xf] }
 0x1da   : > { %1618 = vmatpush.bf16.msra.mxu2 %v2339_v5  ;;  %v2646_v43 = vld [vmem:[%s3100_s11 + $0x1ac] sm:$0xf0]  ;;  %v2476_v46 = vld [vmem:[%s3100_s11 + $0x1b0] sm:$0xf0]  ;;  %v2647_v48 = vld [vmem:[%s3100_s11 + $0x1b4] sm:$0xf0] }
 0x1db   : > { %1631 = vmatpush.bf16.msra.mxu3 %v2343_v9  ;;  %v2643_v49 = vld [vmem:[%s3100_s11 + $0x19c] sm:$0xf]  ;;  %v3276_v51 = vld [vmem:[#allocation3] sm:$0xf]  ;;  %v2475_v52 = vor.u32 %v2646_v43, %v2474_v42  ;;  %v2479_v53 = vor.u32 %v2642_v44, %v2476_v46  ;;  %v2483_v54 = vor.u32 %v2647_v48, %v2482_v47  ;;  %v2442_v55 = vld [vmem:[%s3100_s11 + $0x150] sm:$0xf] }
 0x1dc   : > { %v2484_v50 = vld [vmem:[%s3100_s11 + $0x1b8] sm:$0xf0]  ;;  %v2638_v56 = vld [vmem:[%s3100_s11 + $0x16c] sm:$0xf0]  ;;  %v2634_v57 = vld [vmem:[%s3100_s11 + $0x154] sm:$0xf] }
 0x1dd   : > { %1593 = vmatpush.bf16.msra.mxu0 %v2299_v15  ;;  %1606 = vmatpush.bf16.msra.mxu1 %v2303_v18  ;;  %v2487_v58 = vor.u32 %v2643_v49, %v2484_v50  ;;  %v2444_v59 = vld [vmem:[%s3100_s11 + $0x170] sm:$0xf0]  ;;  %v2450_v60 = vld [vmem:[%s3100_s11 + $0x158] sm:$0xf]  ;;  %v2635_v62 = vld [vmem:[%s3100_s11 + $0x15c] sm:$0xf]  ;;  %v2443_v0 = vor.u32 %v2638_v56, %v2442_v55 }
 0x1de   : > { %1619 = vmatpush.bf16.msra.mxu2 %v2307_v19  ;;  %v2639_v61 = vld [vmem:[%s3100_s11 + $0x174] sm:$0xf0]  ;;  %v2452_v63 = vld [vmem:[%s3100_s11 + $0x178] sm:$0xf0]  ;;  %v2447_v1 = vor.u32 %v2634_v57, %v2444_v59  ;;  %v2410_v3 = vld [vmem:[%s3100_s11 + $0x110] sm:$0xf] }
 0x1df   : > { %1632 = vmatpush.bf16.msra.mxu3 %v2311_v23  ;;  %v2451_v2 = vor.u32 %v2639_v61, %v2450_v60  ;;  %v2630_v4 = vld [vmem:[%s3100_s11 + $0x12c] sm:$0xf0]  ;;  %v2626_v5 = vld [vmem:[%s3100_s11 + $0x114] sm:$0xf]  ;;  %v2455_v6 = vor.u32 %v2635_v62, %v2452_v63  ;;  %v2418_v8 = vld [vmem:[%s3100_s11 + $0x118] sm:$0xf] }
 0x1e0   : > { %v2412_v7 = vld [vmem:[%s3100_s11 + $0x130] sm:$0xf0]  ;;  %v2631_v9 = vld [vmem:[%s3100_s11 + $0x134] sm:$0xf0]  ;;  %v2627_v10 = vld [vmem:[%s3100_s11 + $0x11c] sm:$0xf]  ;;  %v2411_v12 = vor.u32 %v2630_v4, %v2410_v3 }
 0x1e1   : > { %1594 = vmatpush.bf16.msra.mxu0 %v2267_v30  ;;  %1607 = vmatpush.bf16.msra.mxu1 %v2271_v34  ;;  %v2420_v11 = vld [vmem:[%s3100_s11 + $0x138] sm:$0xf0]  ;;  %v2415_v13 = vor.u32 %v2626_v5, %v2412_v7  ;;  %v2419_v14 = vor.u32 %v2631_v9, %v2418_v8  ;;  %v2378_v15 = vld [vmem:[%s3100_s11 + $0xd0] sm:$0xf]  ;;  %v2618_v17 = vld [vmem:[%s3100_s11 + $0xd4] sm:$0xf] }
 0x1e2   : > { %1620 = vmatpush.bf16.msra.mxu2 %v2275_v35  ;;  %v2622_v16 = vld [vmem:[%s3100_s11 + $0xec] sm:$0xf0]  ;;  %v2423_v18 = vor.u32 %v2627_v10, %v2420_v11  ;;  %v2380_v19 = vld [vmem:[%s3100_s11 + $0xf0] sm:$0xf0]  ;;  %v2386_v20 = vld [vmem:[%s3100_s11 + $0xd8] sm:$0xf] }
 0x1e3   : > { %1633 = vmatpush.bf16.msra.mxu3 %v2279_v38  ;;  %v2623_v21 = vld [vmem:[%s3100_s11 + $0xf4] sm:$0xf0]  ;;  %v2619_v22 = vld [vmem:[%s3100_s11 + $0xdc] sm:$0xf]  ;;  %v2379_v24 = vor.u32 %v2622_v16, %v2378_v15  ;;  %v2383_v25 = vor.u32 %v2618_v17, %v2380_v19  ;;  %v2346_v27 = vld [vmem:[%s3100_s11 + $0x90] sm:$0xf] }
 0x1e4   : > { %1595 = vmatmul.bf16.vlgmr.msra.gmra.mxu0 %v3276_v51  ;;  %1608 = vmatmul.bf16.vlgmr.msra.gmra.mxu1 %v3276_v51  ;;  %v2388_v23 = vld [vmem:[%s3100_s11 + $0xf8] sm:$0xf0]  ;;  %v2387_v26 = vor.u32 %v2623_v21, %v2386_v20  ;;  %v2614_v28 = vld [vmem:[%s3100_s11 + $0xac] sm:$0xf0]  ;;  %v2610_v29 = vld [vmem:[%s3100_s11 + $0x94] sm:$0xf] }
 0x1e5   : > { %1639 = vmatpush.bf16.msrb.mxu0 %v2507_v39  ;;  %1652 = vmatpush.bf16.msrb.mxu1 %v2511_v40  ;;  %v2391_v30 = vor.u32 %v2619_v22, %v2388_v23  ;;  %v2348_v31 = vld [vmem:[%s3100_s11 + $0xb0] sm:$0xf0]  ;;  %v2354_v32 = vld [vmem:[%s3100_s11 + $0x98] sm:$0xf]  ;;  %v2611_v34 = vld [vmem:[%s3100_s11 + $0x9c] sm:$0xf]  ;;  %v2347_v36 = vor.u32 %v2614_v28, %v2346_v27 }
 0x1e6   : > { %1665 = vmatpush.bf16.msrb.mxu2 %v2515_v41  ;;  %1634 = vmatmul.bf16.vlgmr.msra.gmra.mxu3 %v3276_v51  ;;  %v2615_v33 = vld [vmem:[%s3100_s11 + $0xb4] sm:$0xf0]  ;;  %v2356_v35 = vld [vmem:[%s3100_s11 + $0xb8] sm:$0xf0]  ;;  %v2351_v37 = vor.u32 %v2610_v29, %v2348_v31  ;;  %v2314_v39 = vld [vmem:[%s3100_s11 + $0x50] sm:$0xf] }
 0x1e7   : > { %1678 = vmatpush.bf16.msrb.mxu3 %v2519_v45  ;;  %1621 = vmatmul.bf16.vlgmr.msra.gmra.mxu2 %v3276_v51  ;;  %v2355_v38 = vor.u32 %v2615_v33, %v2354_v32  ;;  %v2606_v40 = vld [vmem:[%s3100_s11 + $0x6c] sm:$0xf0]  ;;  %v2602_v41 = vld [vmem:[%s3100_s11 + $0x54] sm:$0xf]  ;;  %v2359_v42 = vor.u32 %v2611_v34, %v2356_v35  ;;  %v2322_v44 = vld [vmem:[%s3100_s11 + $0x58] sm:$0xf] }
 0x1e8   : > { %v2316_v43 = vld [vmem:[%s3100_s11 + $0x70] sm:$0xf0]  ;;  %v2607_v45 = vld [vmem:[%s3100_s11 + $0x74] sm:$0xf0]  ;;  %v2603_v46 = vld [vmem:[%s3100_s11 + $0x5c] sm:$0xf]  ;;  %v2315_v48 = vor.u32 %v2606_v40, %v2314_v39 }
 0x1e9   : > { %1640 = vmatpush.bf16.msrb.mxu0 %v2475_v52  ;;  %1653 = vmatpush.bf16.msrb.mxu1 %v2479_v53  ;;  %v2324_v47 = vld [vmem:[%s3100_s11 + $0x78] sm:$0xf0]  ;;  %v2319_v49 = vor.u32 %v2602_v41, %v2316_v43  ;;  %v2323_v50 = vor.u32 %v2607_v45, %v2322_v44  ;;  %v2282_v52 = vld [vmem:[%s3100_s11 + $0x10] sm:$0xf]  ;;  %v2284_v56 = vld [vmem:[%s3100_s11 + $0x30] sm:$0xf0] }
 0x1ea   : > { %1666 = vmatpush.bf16.msrb.mxu2 %v2483_v54  ;;  %v2598_v53 = vld [vmem:[%s3100_s11 + $0x2c] sm:$0xf0]  ;;  %v2594_v54 = vld [vmem:[%s3100_s11 + $0x14] sm:$0xf]  ;;  %v2327_v55 = vor.u32 %v2603_v46, %v2324_v47  ;;  %v2290_v57 = vld [vmem:[%s3100_s11 + $0x18] sm:$0xf] }
 0x1eb   : > { %1679 = vmatpush.bf16.msrb.mxu3 %v2487_v58  ;;  %v2599_v58 = vld [vmem:[%s3100_s11 + $0x34] sm:$0xf0]  ;;  %v2595_v59 = vld [vmem:[%s3100_s11 + $0x1c] sm:$0xf]  ;;  %v2283_v61 = vor.u32 %v2598_v53, %v2282_v52  ;;  %v2287_v62 = vor.u32 %v2594_v54, %v2284_v56  ;;  %v1699_v10 = vld [vmem:[#allocation5] sm:$0xff] }
 0x1ec   : > { %v2292_v60 = vld [vmem:[%s3100_s11 + $0x38] sm:$0xf0]  ;;  %v2291_v63 = vor.u32 %v2599_v58, %v2290_v57  ;;  %v1703_v15 = vunpack.c.l.bf16 %v1699_v10  ;;  %v1704_v17 = vunpack.c.h.bf16 %v1699_v10  ;;  %v1701_v33 = vld [vmem:[#allocation5 + $0x10] sm:$0xff] }
 0x1ed   : > { %1641 = vmatpush.bf16.msrb.mxu0 %v2443_v0  ;;  %1654 = vmatpush.bf16.msrb.mxu1 %v2447_v1  ;;  %v2295_v0 = vor.u32 %v2595_v59, %v2292_v60  ;;  %v3339_v1 = vld [vmem:[%s462_s14] sm:$0xff]  ;;  %v1707_v40 = vunpack.c.l.bf16 %v1701_v33  ;;  %v1708_v41 = vunpack.c.h.bf16 %v1701_v33 }
 0x1ee   : > { %1667 = vmatpush.bf16.msrb.mxu2 %v2451_v2  ;;  %v1251_v2 = vperm.slane %v3339_v1, 0  ;;  %v1252_v3 = vperm.slane %v3339_v1, 1  ;;  %v1253_v8 = vperm.slane %v3339_v1, 2  ;;  %v1711_v19 = vmax.f32 %v1703_v15, 0.0 }
 0x1ef   : > { %1680 = vmatpush.bf16.msrb.mxu3 %v2455_v6  ;;  %v1712_v23 = vmax.f32 %v1704_v17, 0.0  ;;  %v1255_v43 = vperm.slane %v3339_v1, 4  ;;  %v1256_v44 = vperm.slane %v3339_v1, 5  ;;  %v1716_v53 = vmax.f32 %v1708_v41, 0.0 }
 0x1f1   : > { %1642 = vmatpush.bf16.msrb.mxu0 %v2411_v12  ;;  %1655 = vmatpush.bf16.msrb.mxu1 %v2415_v13 }
 0x1f2   : > { %1668 = vmatpush.bf16.msrb.mxu2 %v2419_v14 }
 0x1f3   : > { %1681 = vmatpush.bf16.msrb.mxu3 %v2423_v18  ;;  %v1700_v18 = vld [vmem:[#allocation5 + $0x8] sm:$0xff] }
 0x1f4   : > { %v1705_v20 = vunpack.c.l.bf16 %v1700_v18  ;;  %v1706_v28 = vunpack.c.h.bf16 %v1700_v18 }
 0x1f5   : > { %1643 = vmatpush.bf16.msrb.mxu0 %v2379_v24  ;;  %1656 = vmatpush.bf16.msrb.mxu1 %v2383_v25 }
 0x1f6   : > { %1669 = vmatpush.bf16.msrb.mxu2 %v2387_v26  ;;  %v1719_v26 = vmin.f32 %v1711_v19, 1.0  ;;  %v1713_v27 = vmax.f32 %v1705_v20, 0.0  ;;  %v1714_v35 = vmax.f32 %v1706_v28, 0.0 }
 0x1f7   : > { %1682 = vmatpush.bf16.msrb.mxu3 %v2391_v30  ;;  %v1720_v30 = vmin.f32 %v1712_v23, 1.0 }
 0x1f8   : > { %v1721_v34 = vmin.f32 %v1713_v27, 1.0 }
 0x1f9   : > { %1644 = vmatpush.bf16.msrb.mxu0 %v2347_v36  ;;  %1657 = vmatpush.bf16.msrb.mxu1 %v2351_v37 }
 0x1fa   : > { %1670 = vmatpush.bf16.msrb.mxu2 %v2355_v38 }
 0x1fb   : > { %1683 = vmatpush.bf16.msrb.mxu3 %v2359_v42  ;;  %v1722_v42 = vmin.f32 %v1714_v35, 1.0 }
 0x1fd   : > { %1645 = vmatpush.bf16.msrb.mxu0 %v2315_v48  ;;  %1658 = vmatpush.bf16.msrb.mxu1 %v2319_v49  ;;  %v1702_v49 = vld [vmem:[#allocation5 + $0x18] sm:$0xff] }
 0x1fe   : > { %1671 = vmatpush.bf16.msrb.mxu2 %v2323_v50  ;;  %v1715_v50 = vmax.f32 %v1707_v40, 0.0  ;;  %v1709_v56 = vunpack.c.l.bf16 %v1702_v49 }
 0x1ff   : > { %1684 = vmatpush.bf16.msrb.mxu3 %v2327_v55 }
 0x201   : > { %1646 = vmatpush.bf16.msrb.mxu0 %v2283_v61  ;;  %1659 = vmatpush.bf16.msrb.mxu1 %v2287_v62  ;;  %v1723_v61 = vmin.f32 %v1715_v50, 1.0 }
 0x202   : > { %1672 = vmatpush.bf16.msrb.mxu2 %v2291_v63  ;;  %v1710_v63 = vunpack.c.h.bf16 %v1702_v49 }
 0x203   : > { %1685 = vmatpush.bf16.msrb.mxu3 %v2295_v0  ;;  %v1724_v0 = vmin.f32 %v1716_v53, 1.0 }
 0x204   : > { %1647 = vmatmul.bf16.vlgmr.msrb.gmra.mxu0 %v3276_v51  ;;  %1660 = vmatmul.bf16.vlgmr.msrb.gmra.mxu1 %v3276_v51 }
 0x205   : > { %1673 = vmatmul.bf16.vlgmr.msrb.gmra.mxu2 %v3276_v51 }
 0x206   : > { %1686 = vmatmul.bf16.vlgmr.msrb.gmra.mxu3 %v3276_v51  ;;  %v1254_v51 = vperm.slane %v3339_v1, 3 }
 0x261   : > { %v1596_v4 = vpop.f32.mrf.mxu0  ;;  %v1609_v6 = vpop.f32.mrf.mxu1 }
 0x262   : > { %v1597_v5 = vadd.f32 %v1596_v4, %v1251_v2  ;;  %v1610_v7 = vadd.f32 %v1609_v6, %v1252_v3  ;;  %v1257_v3 = vperm.slane %v3339_v1, 6 }
 0x264   : > { %1691 = vst [vmem:[%s3117_s26] sm:$0xff] %v1597_v5  ;;  %v1727_v22 = vmax.f32 %v1597_v5, 0.0  ;;  %v1728_v24 = vmax.f32 %v1610_v7, 0.0  ;;  %v1258_v5 = vperm.slane %v3339_v1, 7 }
 0x265   : > { %1692 = vst [vmem:[%s3117_s26 + $0x8] sm:$0xff] %v1610_v7 }
 0x266   : > { %v1735_v29 = vmin.f32 %v1727_v22, 1.0  ;;  %v1736_v31 = vmin.f32 %v1728_v24, 1.0 }
 0x268   : > { %v1743_v36 = vsub.f32 %v1719_v26, %v1735_v29  ;;  %v1744_v37 = vsub.f32 %v1720_v30, %v1736_v31 }
 0x269   : > { %v1635_v12 = vpop.f32.mrf.mxu3  ;;  %v1598_v14 = vpop.f32.mrf.mxu0 }
 0x26a   : > { %v1622_v9 = vpop.f32.mrf.mxu2  ;;  %v1636_v13 = vadd.f32 %v1635_v12, %v1254_v51  ;;  %v1611_v16 = vpop.f32.mrf.mxu1  ;;  %v1751_v45 = vmul.f32 %v1743_v36, %v1743_v36  ;;  %v1752_v46 = vmul.f32 %v1744_v37, %v1744_v37  ;;  %v1717_v51 = vmax.f32 %v1709_v56, 0.0 }
 0x26b   : > { %v1623_v11 = vadd.f32 %v1622_v9, %v1253_v8 }
 0x26c   : > { %1694 = vst [vmem:[%s3117_s26 + $0x18] sm:$0xff] %v1636_v13  ;;  %v1730_v39 = vmax.f32 %v1636_v13, 0.0  ;;  %v1759_v57 = vadd.f32 %v1752_v46, %v1751_v45  ;;  %v1725_v1 = vmin.f32 %v1717_v51, 1.0 }
 0x26d   : > { %1693 = vst [vmem:[%s3117_s26 + $0x10] sm:$0xff] %v1623_v11  ;;  %v1729_v32 = vmax.f32 %v1623_v11, 0.0  ;;  %v1718_v11 = vmax.f32 %v1710_v63, 0.0 }
 0x26e   : > { %v1738_v48 = vmin.f32 %v1730_v39, 1.0 }
 0x26f   : > { %v1737_v38 = vmin.f32 %v1729_v32, 1.0  ;;  %v1726_v22 = vmin.f32 %v1718_v11, 1.0 }
 0x270   : > { %v1746_v59 = vsub.f32 %v1722_v42, %v1738_v48 }
 0x271   : > { %v1637_v25 = vpop.f32.mrf.mxu3  ;;  %v1745_v47 = vsub.f32 %v1721_v34, %v1737_v38 }
 0x272   : > { %v1624_v21 = vpop.f32.mrf.mxu2  ;;  %v1754_v7 = vmul.f32 %v1746_v59, %v1746_v59 }
 0x273   : > { %v1753_v58 = vmul.f32 %v1745_v47, %v1745_v47 }
 0x275   : > { %v1760_v6 = vadd.f32 %v1759_v57, %v1753_v58 }
 0x277   : > { %v1761_v19 = vadd.f32 %v1760_v6, %v1754_v7 }
 0x281   : > { %v1648_v52 = vpop.f32.mrf.mxu0  ;;  %v1661_v55 = vpop.f32.mrf.mxu1 }
 0x282   : > { %v1649_v54 = vadd.f32 %v1648_v52, %v1255_v43  ;;  %v1662_v60 = vadd.f32 %v1661_v55, %v1256_v44 }
 0x284   : > { %1695 = vst [vmem:[%s3117_s26 + $0x20] sm:$0xff] %v1649_v54  ;;  %v1731_v62 = vmax.f32 %v1649_v54, 0.0  ;;  %v1732_v2 = vmax.f32 %v1662_v60, 0.0 }
 0x285   : > { %1696 = vst [vmem:[%s3117_s26 + $0x28] sm:$0xff] %v1662_v60 }
 0x286   : > { %v1739_v4 = vmin.f32 %v1731_v62, 1.0  ;;  %v1740_v8 = vmin.f32 %v1732_v2, 1.0 }
 0x288   : > { %v1747_v9 = vsub.f32 %v1723_v61, %v1739_v4  ;;  %v1674_v10 = vpop.f32.mrf.mxu2  ;;  %v1748_v12 = vsub.f32 %v1724_v0, %v1740_v8 }
 0x289   : > { %v1675_v13 = vadd.f32 %v1674_v10, %v1257_v3  ;;  %v1687_v14 = vpop.f32.mrf.mxu3  ;;  %v1650_v15 = vpop.f32.mrf.mxu0 }
 0x28a   : > { %v1755_v16 = vmul.f32 %v1747_v9, %v1747_v9  ;;  %v1688_v17 = vadd.f32 %v1687_v14, %v1258_v5  ;;  %v1663_v18 = vpop.f32.mrf.mxu1  ;;  %v1756_v23 = vmul.f32 %v1748_v12, %v1748_v12 }
 0x28b   : > { %1697 = vst [vmem:[%s3117_s26 + $0x30] sm:$0xff] %v1675_v13  ;;  %v1733_v20 = vmax.f32 %v1675_v13, 0.0 }
 0x28c   : > { %1698 = vst [vmem:[%s3117_s26 + $0x38] sm:$0xff] %v1688_v17  ;;  %v1734_v21 = vmax.f32 %v1688_v17, 0.0  ;;  %v1762_v25 = vadd.f32 %v1761_v19, %v1755_v16 }
 0x28d   : > { %v1741_v24 = vmin.f32 %v1733_v20, 1.0 }
 0x28e   : > { %v1742_v26 = vmin.f32 %v1734_v21, 1.0  ;;  %v1763_v32 = vadd.f32 %v1762_v25, %v1756_v23 }
 0x28f   : > { %v1749_v27 = vsub.f32 %v1725_v1, %v1741_v24 }
 0x290   : > { %v1676_v28 = vpop.f32.mrf.mxu2  ;;  %v1750_v29 = vsub.f32 %v1726_v22, %v1742_v26 }
 0x291   : > { %v1689_v30 = vpop.f32.mrf.mxu3  ;;  %v1757_v31 = vmul.f32 %v1749_v27, %v1749_v27 }
 0x292   : > { %v1758_v33 = vmul.f32 %v1750_v29, %v1750_v29 }
 0x293   : > { %v1764_v34 = vadd.f32 %v1763_v32, %v1757_v31 }
 0x295   : > { %v1765_v35 = vadd.f32 %v1764_v34, %v1758_v33 }
 0x297   : > { %1766 = vadd.xlane.f32.xlu0 %v1765_v35 }
 0x306   : > { %1771 = sbr.rel (%p2520_p10) target bundleno = 781 (0x30d), region = 76 }
 0x30a   : > { %v1767_v36 = vpop.xlane.xlu0 %1766 }
 0x30b   : > { %vm1772_vm3 = vcmask 7168  }
 0x30c   : > { %1773 = vst.msk [vmem:[#allocation4] sm:$0xff] %vm1772_vm3, %v1767_v36 }
 0x30d PF: > { %p2521_p11 = scmp.le.s32.totalorder %s2916_s28, 1 }
 0x30f   : > { %1777 = sbr.rel (%p2521_p11) target bundleno = 792 (0x318), region = 80 }
 0x314   : > { %v1778_v37 = vld [vmem:[#allocation4] sm:$0xff]  ;;  %vm1780_vm4 = vcmask 7168  }
 0x315   : > { %v1779_v38 = vadd.f32 %v1778_v37, %v1767_v36 }
 0x317   : > { %1781 = vst.msk [vmem:[#allocation4] sm:$0xff] %vm1780_vm4, %v1779_v38 }
 0x318 PF: > { %p2522_p12 = scmp.ne.s32.totalorder %s2916_s28, 1 }
 0x31a   : > { %1785 = sbr.rel (%p2522_p12) target bundleno = 801 (0x321), region = 84 }
 0x31f   : > { %v1786_v39 = vld [vmem:[#allocation4] sm:$0xff]  ;;  %vm1787_vm5 = vcmask 7168  }
 0x320   : > { %1788 = vst.msk [vmem:[%s3389_s7] sm:$0xff] %vm1787_vm5, %v1786_v39 }
 0x321 PF: > { %s22_s30 = sadd.s32 1, %s2924_s30   ;;  %s3395_s24 = smov %s2904_s25 }
 0x322   : > { %p19_p0 = scmp.ge.s32.totalorder %s22_s30, 4   ;;  %s3367_s25 = smov 0  }
 0x323   : > { %s3396_s26 = smov %s2912_s27  ;;  %s3372_s27 = smov 0  }
 0x324   : > { %s3397_s28 = smov %s2920_s29  ;;  %s3398_s29 = smov %s3400_s8 }
 0x325   :  { %21 = sbr.rel (!%p19_p0) target bundleno = 6 (0x6), region = 147 }
 0x32a   :  { %1842 = vsyncpa [#allocation6], 1 }
 0x32b   :  { %1844 = vsyncpa [#allocation6 + $0x1], 1 }
 0x32c   :  { %1845 = vsyncpa [#allocation8], 1 }
 0x32d   :  { %1847 = vsyncpa [#allocation8 + $0x1], 1 }

</bundles_post_ra>
